<compile_context>
chip_gen: v7x
topology: tpu7x:2x2x1
jax: 0.10.0
libtpu: 0.0.40
codegen_flags: <defaults>
</compile_context>

<pallas_src>
import numpy as np
import jax
import jax.numpy as jnp
from jax.experimental import pallas as pl
from jax.experimental.pallas import tpu as pltpu  # noqa: F401  (TPU backend; defaults suffice at this size)

# --- model hyper-parameters (small, consistent with the module's args) --------
B, S = 2, 8                 # batch, sequence length
D = 32                      # SelfAttn_ModelDim == SelfAttn_WordVecDim
H, DK, DV = 4, 8, 8         # SelfAttn_NumHead, SelfAttn_KDim, SelfAttn_VDim
HDK = H * DK                # 32
D_INNER = 64                # SelfAttn_FFInnerDim
N_LAYERS = 2                # SelfAttn_NumLayers
VOCAB = 50                  # vocab_size
OUT_DIM = 16                # textModel_outDim
LN_EPS = 1e-5               # torch.nn.LayerNorm default

BS = B * S                  # 16 activation rows
G = B * H                   # 8 (head, batch) attention groups, group g = h*B + b
GS = G * S                  # 64 lane-concatenated key positions

# weight-blob row offsets (all multiples of 8 -> cheap sublane slices)
R_WQKV, R_WO, R_W1, R_W2, R_VEC = 0, 32, 64, 96, 160
WROWS, WLANES = 168, 3 * HDK        # (168, 96) per layer

# dropout = 0 (eval semantics); PAD tokens are not generated, so the key-pad / non-pad masks
# of the reference Encoder are identities.
# TODO(synk): padding mask for PAD(=0) tokens not implemented (inputs contain no PAD).


# --- fused Pallas kernel -------------------------------------------------------
def fused_model_kernel(x_ref, wb_ref, const_ref, o_ref):
    """All encoder layers + final fc + sum over seq, for the whole (tiny) batch."""
    x = x_ref[...]                                   # (BS, D)

    # loop-invariant constants, loaded once
    blockones = const_ref[0]                         # (GS, GS) block-diag of SxS all-ones
    kmask = const_ref[1, 0:HDK, :]                   # (HDK, GS) head selector for K^T tile
    pmask = const_ref[2, 0:BS, :]                    # (BS, GS)  same-batch selector for P
    vmask = const_ref[3, :, 0:H * DV]                # (GS, H*DV) head selector for V tile

    for l in range(N_LAYERS):                        # static unroll over layers
        wqkv = wb_ref[l, R_WQKV:R_WQKV + D, :]               # (D, 3*HDK) (Q part pre-scaled)
        wo   = wb_ref[l, R_WO:R_WO + H * DV, 0:D]            # (H*DV, D)
        w1   = wb_ref[l, R_W1:R_W1 + D, 0:D_INNER]           # (D, D_INNER)
        w2   = wb_ref[l, R_W2:R_W2 + D_INNER, 0:D]           # (D_INNER, D)
        bqkv = wb_ref[l, R_VEC + 0:R_VEC + 1, :]             # (1, 3*HDK)
        b1   = wb_ref[l, R_VEC + 1:R_VEC + 2, 0:D_INNER]     # (1, D_INNER)
        bo   = wb_ref[l, R_VEC + 2:R_VEC + 3, 0:D]
        g1   = wb_ref[l, R_VEC + 3:R_VEC + 4, 0:D]
        be1  = wb_ref[l, R_VEC + 4:R_VEC + 5, 0:D]
        b2   = wb_ref[l, R_VEC + 5:R_VEC + 6, 0:D]
        g2   = wb_ref[l, R_VEC + 6:R_VEC + 7, 0:D]
        be2  = wb_ref[l, R_VEC + 7:R_VEC + 8, 0:D]

        # ---- fused QKV projection (softmax scale folded into Q at pack time) ----
        qkv = jnp.dot(x, wqkv, preferred_element_type=jnp.float32) + bqkv    # (BS, 3*HDK)
        q  = qkv[:, 0:HDK]                           # (BS, HDK)
        kt = qkv[:, HDK:2 * HDK].T                   # (HDK, BS)  the ONLY transpose per layer
        v  = qkv[:, 2 * HDK:3 * HDK]                 # (BS, H*DV)

        # block-diagonal K^T / V over the (head, batch) groups: tile + 0/1 mask
        kt_bd = jnp.concatenate([kt] * H, axis=1) * kmask    # (HDK, GS)
        v_bd  = jnp.concatenate([v] * H, axis=0) * vmask     # (GS, H*DV)

        # all heads & batches: one scores dot, one denominator dot, one P@V dot
        s = jnp.dot(q, kt_bd, preferred_element_type=jnp.float32)            # (BS, GS)
        s = s - jnp.max(s, axis=-1, keepdims=True)            # whole-row max (exact shift)
        p = jnp.exp(s)
        denom = jnp.dot(p, blockones, preferred_element_type=jnp.float32)    # per-group sums
        p = p * pl.reciprocal(denom, approx=True) * pmask     # normalize, zero cross-batch

        heads = jnp.dot(p, v_bd, preferred_element_type=jnp.float32)         # (BS, H*DV)
        attn = jnp.dot(heads, wo, preferred_element_type=jnp.float32) + bo   # (BS, D)

        # ---- residual + layer norm 1 (independent E[x], E[x^2] reductions) ----
        r1 = attn + x
        mu1 = jnp.mean(r1, axis=-1, keepdims=True)
        ms1 = jnp.mean(r1 * r1, axis=-1, keepdims=True)
        ln1 = (r1 - mu1) * jax.lax.rsqrt(ms1 - mu1 * mu1 + LN_EPS) * g1 + be1

        # ---- position-wise feed-forward (Conv1d k=1 == Linear) ----
        h1 = jnp.maximum(
            jnp.dot(ln1, w1, preferred_element_type=jnp.float32) + b1, 0.0)
        h2 = jnp.dot(h1, w2, preferred_element_type=jnp.float32) + b2

        # ---- residual + layer norm 2 ----
        r2 = h2 + ln1
        mu2 = jnp.mean(r2, axis=-1, keepdims=True)
        ms2 = jnp.mean(r2 * r2, axis=-1, keepdims=True)
        x = (r2 - mu2) * jax.lax.rsqrt(ms2 - mu2 * mu2 + LN_EPS) * g2 + be2

    # ---- fc + sum over seq:  sum_s(x W + b) == (sum_s x) W + S*b ----
    smat = const_ref[4, 0:B, 0:BS]                   # (B, BS) per-batch seq-sum matrix
    fcw  = const_ref[4, 8:8 + D, 0:OUT_DIM]          # (D, OUT_DIM)
    fcbS = const_ref[4, 40:41, 0:OUT_DIM]            # (1, OUT_DIM) == S * fc_b (pre-folded)
    xsum = jnp.dot(smat, x, preferred_element_type=jnp.float32)              # (B, D)
    o_ref[...] = jnp.dot(xsum, fcw, preferred_element_type=jnp.float32) + fcbS


# --- wrappers -------------------------------------------------------------------
@jax.jit
def self_attn_model_pallas(tokens, emb, pos_tbl, wblob, const):
    # embedding + sinusoidal position lookup kept as (tiny) plain-JAX glue.
    pos = jnp.arange(1, S + 1)                                        # positions 1..S (0 = PAD)
    x = jnp.take(emb, tokens, axis=0) + pos_tbl[pos][None, :, :]      # (B, S, D)
    x = x.reshape(BS, D)                                              # one block for the kernel
    return pl.pallas_call(
        fused_model_kernel,
        out_shape=jax.ShapeDtypeStruct((B, OUT_DIM), jnp.float32),
    )(x, wblob, const)


def pack_params(layer_params, fc_w, fc_b):
    """Pack per-layer weights into one slab and all constants/masks into another."""
    scale = 1.0 / (float(DK) ** 0.5)

    wb_layers = []
    for (wq, bq, wk, bk, wv, bv, wo, bo, g1, be1, w1, b1, w2, b2, g2, be2) in layer_params:
        blob = np.zeros((WROWS, WLANES), np.float32)
        blob[R_WQKV:R_WQKV + D, :] = np.concatenate(
            [np.asarray(wq) * scale, np.asarray(wk), np.asarray(wv)], axis=1)
        blob[R_WO:R_WO + H * DV, 0:D] = np.asarray(wo)
        blob[R_W1:R_W1 + D, 0:D_INNER] = np.asarray(w1)
        blob[R_W2:R_W2 + D_INNER, 0:D] = np.asarray(w2)
        blob[R_VEC + 0, :] = np.concatenate(
            [np.asarray(bq) * scale, np.asarray(bk), np.asarray(bv)], axis=1)[0]
        blob[R_VEC + 1, 0:D_INNER] = np.asarray(b1)[0]
        blob[R_VEC + 2, 0:D] = np.asarray(bo)[0]
        blob[R_VEC + 3, 0:D] = np.asarray(g1)[0]
        blob[R_VEC + 4, 0:D] = np.asarray(be1)[0]
        blob[R_VEC + 5, 0:D] = np.asarray(b2)[0]
        blob[R_VEC + 6, 0:D] = np.asarray(g2)[0]
        blob[R_VEC + 7, 0:D] = np.asarray(be2)[0]
        wb_layers.append(blob)
    wblob = jnp.asarray(np.stack(wb_layers))                 # (L, WROWS, WLANES)

    const = np.zeros((5, GS, GS), np.float32)
    # [0] block-diagonal all-ones over (head,batch) groups of S key columns
    const[0] = np.kron(np.eye(G, dtype=np.float32), np.ones((S, S), np.float32))
    # [1] kmask / [2] pmask / [3] vmask  (group g = h*B + b)
    for h in range(H):
        for b in range(B):
            g = h * B + b
            const[1, h * DK:(h + 1) * DK, g * S:(g + 1) * S] = 1.0   # head rows of tiled K^T
            const[2, b * S:(b + 1) * S, g * S:(g + 1) * S] = 1.0     # same-batch groups only
            const[3, g * S:(g + 1) * S, h * DV:(h + 1) * DV] = 1.0   # head lanes of tiled V
    # [4] seq-sum matrix + fc weights / bias (bias pre-multiplied by S)
    const[4, 0:B, 0:BS] = np.kron(np.eye(B, dtype=np.float32), np.ones((1, S), np.float32))
    const[4, 8:8 + D, 0:OUT_DIM] = np.asarray(fc_w)
    const[4, 40, 0:OUT_DIM] = float(S) * np.asarray(fc_b)[0]
    return wblob, jnp.asarray(const)


# --- parameters / glue ----------------------------------------------------------
def sinusoid_table(n_position, d_hid):
    pos = np.arange(n_position)[:, None].astype(np.float64)
    i = np.arange(d_hid)[None, :].astype(np.float64)
    angle = pos / np.power(10000.0, 2.0 * (i // 2) / d_hid)
    tbl = np.zeros((n_position, d_hid), dtype=np.float32)
    tbl[:, 0::2] = np.sin(angle[:, 0::2])
    tbl[:, 1::2] = np.cos(angle[:, 1::2])
    tbl[0] = 0.0                                                     # padding position
    return jnp.asarray(tbl)


def init_params(key):
    def dense(k, n_in, n_out, scale=0.05):
        kw, kb = jax.random.split(k)
        w = scale * jax.random.normal(kw, (n_in, n_out), jnp.float32)
        b = scale * jax.random.normal(kb, (1, n_out), jnp.float32)
        return w, b

    keys = jax.random.split(key, 2 + 6 * N_LAYERS)
    emb = 0.1 * jax.random.normal(keys[0], (VOCAB, D), jnp.float32)
    emb = emb.at[0].set(0.0)                                         # padding_idx = 0

    layer_params = []
    for l in range(N_LAYERS):
        k = keys[2 + 6 * l: 2 + 6 * (l + 1)]
        wq, bq = dense(k[0], D, H * DK)
        wk, bk = dense(k[1], D, H * DK)
        wv, bv = dense(k[2], D, H * DV)
        wo, bo = dense(k[3], H * DV, D)
        w1, b1 = dense(k[4], D, D_INNER)
        w2, b2 = dense(k[5], D_INNER, D)
        g1 = jnp.ones((1, D), jnp.float32); be1 = jnp.zeros((1, D), jnp.float32)
        g2 = jnp.ones((1, D), jnp.float32); be2 = jnp.zeros((1, D), jnp.float32)
        layer_params.append((wq, bq, wk, bk, wv, bv, wo, bo,
                             g1, be1, w1, b1, w2, b2, g2, be2))

    fc_w, fc_b = dense(keys[1], D, OUT_DIM)
    return emb, sinusoid_table(S + 1, D), layer_params, fc_w, fc_b


# --- pure-JAX reference for correctness check -----------------------------------
def _layer_norm_ref(x, g, b):
    mu = x.mean(-1, keepdims=True)
    var = ((x - mu) ** 2).mean(-1, keepdims=True)
    return (x - mu) * jax.lax.rsqrt(var + LN_EPS) * g + b


def self_attn_model_ref(tokens, emb, pos_tbl, layer_params, fc_w, fc_b):
    pos = jnp.arange(1, S + 1)
    x = jnp.take(emb, tokens, axis=0) + pos_tbl[pos][None, :, :]
    for (wq, bq, wk, bk, wv, bv, wo, bo, g1, be1, w1, b1, w2, b2, g2, be2) in layer_params:
        q = (x @ wq + bq).reshape(B, S, H, DK).transpose(0, 2, 1, 3)
        k = (x @ wk + bk).reshape(B, S, H, DK).transpose(0, 2, 1, 3)
        v = (x @ wv + bv).reshape(B, S, H, DV).transpose(0, 2, 1, 3)
        s = jnp.einsum('bhqd,bhkd->bhqk', q, k) / (float(DK) ** 0.5)
        p = jax.nn.softmax(s, axis=-1)
        o = jnp.einsum('bhqk,bhkd->bhqd', p, v).transpose(0, 2, 1, 3).reshape(B, S, H * DV)
        ln1 = _layer_norm_ref(o @ wo + bo + x, g1, be1)
        h2 = jax.nn.relu(ln1 @ w1 + b1) @ w2 + b2
        x = _layer_norm_ref(h2 + ln1, g2, be2)
    return (x @ fc_w + fc_b).sum(axis=1)


# --- main ------------------------------------------------------------------------
if __name__ == "__main__":
    key = jax.random.PRNGKey(0)
    k_tok, k_par = jax.random.split(key)
    tokens = jax.random.randint(k_tok, (B, S), 1, VOCAB, dtype=jnp.int32)  # no PAD(0)

    emb, pos_tbl, layer_params, fc_w, fc_b = init_params(k_par)
    wblob, const = pack_params(layer_params, fc_w, fc_b)

    out = self_attn_model_pallas(tokens, emb, pos_tbl, wblob, const)
    out = jax.block_until_ready(out)
    assert out.shape == (B, OUT_DIM), out.shape

    ref = jax.block_until_ready(
        self_attn_model_ref(tokens, emb, pos_tbl, layer_params, fc_w, fc_b))
    np.testing.assert_allclose(np.asarray(out), np.asarray(ref), rtol=3e-3, atol=3e-3)

    print("KERNEL_OK")
</pallas_src>

<mosaic_0001>
module attributes {stable_mosaic.version = 11 : i64} {
  func.func @fused_model_kernel(%arg0: memref<16x32xf32, #tpu.memory_space<vmem>>, %arg1: memref<2x168x96xf32, #tpu.memory_space<vmem>>, %arg2: memref<5x64x64xf32, #tpu.memory_space<vmem>>, %arg3: memref<2x16xf32, #tpu.memory_space<vmem>>) attributes {dimension_semantics = [], scalar_prefetch = 0 : i64, scratch_operands = 0 : i64, tpu.core_type = #tpu.core_type<tc>} {
    %c0 = arith.constant 0 : index
    %c0_0 = arith.constant 0 : index
    %0 = vector.load %arg0[%c0, %c0_0] : memref<16x32xf32, #tpu.memory_space<vmem>>, vector<16x32xf32>
    %c0_1 = arith.constant 0 : index
    %c0_2 = arith.constant 0 : index
    %c0_3 = arith.constant 0 : index
    %1 = vector.load %arg2[%c0_1, %c0_2, %c0_3] : memref<5x64x64xf32, #tpu.memory_space<vmem>>, vector<1x64x64xf32>
    %2 = vector.shape_cast %1 : vector<1x64x64xf32> to vector<64x64xf32>
    %c1 = arith.constant 1 : index
    %c0_4 = arith.constant 0 : index
    %c0_5 = arith.constant 0 : index
    %3 = vector.load %arg2[%c1, %c0_4, %c0_5] : memref<5x64x64xf32, #tpu.memory_space<vmem>>, vector<1x32x64xf32>
    %4 = vector.shape_cast %3 : vector<1x32x64xf32> to vector<32x64xf32>
    %c2 = arith.constant 2 : index
    %c0_6 = arith.constant 0 : index
    %c0_7 = arith.constant 0 : index
    %5 = vector.load %arg2[%c2, %c0_6, %c0_7] : memref<5x64x64xf32, #tpu.memory_space<vmem>>, vector<1x16x64xf32>
    %6 = vector.shape_cast %5 : vector<1x16x64xf32> to vector<16x64xf32>
    %c3 = arith.constant 3 : index
    %c0_8 = arith.constant 0 : index
    %c0_9 = arith.constant 0 : index
    %7 = vector.load %arg2[%c3, %c0_8, %c0_9] : memref<5x64x64xf32, #tpu.memory_space<vmem>>, vector<1x64x32xf32>
    %8 = vector.shape_cast %7 : vector<1x64x32xf32> to vector<64x32xf32>
    %c0_10 = arith.constant 0 : index
    %c0_11 = arith.constant 0 : index
    %c0_12 = arith.constant 0 : index
    %9 = vector.load %arg1[%c0_10, %c0_11, %c0_12] : memref<2x168x96xf32, #tpu.memory_space<vmem>>, vector<1x32x96xf32>
    %10 = vector.shape_cast %9 : vector<1x32x96xf32> to vector<32x96xf32>
    %c0_13 = arith.constant 0 : index
    %c32 = arith.constant 32 : index
    %c0_14 = arith.constant 0 : index
    %11 = vector.load %arg1[%c0_13, %c32, %c0_14] : memref<2x168x96xf32, #tpu.memory_space<vmem>>, vector<1x32x32xf32>
    %12 = vector.shape_cast %11 : vector<1x32x32xf32> to vector<32x32xf32>
    %c0_15 = arith.constant 0 : index
    %c64 = arith.constant 64 : index
    %c0_16 = arith.constant 0 : index
    %13 = vector.load %arg1[%c0_15, %c64, %c0_16] : memref<2x168x96xf32, #tpu.memory_space<vmem>>, vector<1x32x64xf32>
    %14 = vector.shape_cast %13 : vector<1x32x64xf32> to vector<32x64xf32>
    %c0_17 = arith.constant 0 : index
    %c96 = arith.constant 96 : index
    %c0_18 = arith.constant 0 : index
    %15 = vector.load %arg1[%c0_17, %c96, %c0_18] : memref<2x168x96xf32, #tpu.memory_space<vmem>>, vector<1x64x32xf32>
    %16 = vector.shape_cast %15 : vector<1x64x32xf32> to vector<64x32xf32>
    %c0_19 = arith.constant 0 : index
    %c160 = arith.constant 160 : index
    %c0_20 = arith.constant 0 : index
    %17 = vector.load %arg1[%c0_19, %c160, %c0_20] : memref<2x168x96xf32, #tpu.memory_space<vmem>>, vector<1x1x96xf32>
    %18 = vector.shape_cast %17 : vector<1x1x96xf32> to vector<1x96xf32>
    %c0_21 = arith.constant 0 : index
    %c161 = arith.constant 161 : index
    %c0_22 = arith.constant 0 : index
    %19 = vector.load %arg1[%c0_21, %c161, %c0_22] : memref<2x168x96xf32, #tpu.memory_space<vmem>>, vector<1x1x64xf32>
    %20 = vector.shape_cast %19 : vector<1x1x64xf32> to vector<1x64xf32>
    %c0_23 = arith.constant 0 : index
    %c162 = arith.constant 162 : index
    %c0_24 = arith.constant 0 : index
    %21 = vector.load %arg1[%c0_23, %c162, %c0_24] : memref<2x168x96xf32, #tpu.memory_space<vmem>>, vector<1x1x32xf32>
    %22 = vector.shape_cast %21 : vector<1x1x32xf32> to vector<1x32xf32>
    %c0_25 = arith.constant 0 : index
    %c163 = arith.constant 163 : index
    %c0_26 = arith.constant 0 : index
    %23 = vector.load %arg1[%c0_25, %c163, %c0_26] : memref<2x168x96xf32, #tpu.memory_space<vmem>>, vector<1x1x32xf32>
    %24 = vector.shape_cast %23 : vector<1x1x32xf32> to vector<1x32xf32>
    %c0_27 = arith.constant 0 : index
    %c164 = arith.constant 164 : index
    %c0_28 = arith.constant 0 : index
    %25 = vector.load %arg1[%c0_27, %c164, %c0_28] : memref<2x168x96xf32, #tpu.memory_space<vmem>>, vector<1x1x32xf32>
    %26 = vector.shape_cast %25 : vector<1x1x32xf32> to vector<1x32xf32>
    %c0_29 = arith.constant 0 : index
    %c165 = arith.constant 165 : index
    %c0_30 = arith.constant 0 : index
    %27 = vector.load %arg1[%c0_29, %c165, %c0_30] : memref<2x168x96xf32, #tpu.memory_space<vmem>>, vector<1x1x32xf32>
    %28 = vector.shape_cast %27 : vector<1x1x32xf32> to vector<1x32xf32>
    %c0_31 = arith.constant 0 : index
    %c166 = arith.constant 166 : index
    %c0_32 = arith.constant 0 : index
    %29 = vector.load %arg1[%c0_31, %c166, %c0_32] : memref<2x168x96xf32, #tpu.memory_space<vmem>>, vector<1x1x32xf32>
    %30 = vector.shape_cast %29 : vector<1x1x32xf32> to vector<1x32xf32>
    %c0_33 = arith.constant 0 : index
    %c167 = arith.constant 167 : index
    %c0_34 = arith.constant 0 : index
    %31 = vector.load %arg1[%c0_33, %c167, %c0_34] : memref<2x168x96xf32, #tpu.memory_space<vmem>>, vector<1x1x32xf32>
    %32 = vector.shape_cast %31 : vector<1x1x32xf32> to vector<1x32xf32>
    %cst = arith.constant dense<0.000000e+00> : vector<16x96xf32>
    %33 = tpu.matmul %0, %10, %cst {dimension_numbers = #tpu.dot_dimension_numbers<[1], [0], [0], [1], [0, 0, 1, 1], [], []>} : vector<16x32xf32>, vector<32x96xf32>, vector<16x96xf32> -> vector<16x96xf32>
    %34 = vector.broadcast %18 : vector<1x96xf32> to vector<16x96xf32>
    %35 = arith.addf %33, %34 : vector<16x96xf32>
    %36 = vector.extract_strided_slice %35 {offsets = [0, 0], sizes = [16, 32], strides = [1, 1]} : vector<16x96xf32> to vector<16x32xf32>
    %37 = vector.extract_strided_slice %35 {offsets = [0, 32], sizes = [16, 32], strides = [1, 1]} : vector<16x96xf32> to vector<16x32xf32>
    %38 = tpu.transpose %37, [1, 0] : vector<16x32xf32> -> vector<32x16xf32>
    %39 = vector.extract_strided_slice %35 {offsets = [0, 64], sizes = [16, 32], strides = [1, 1]} : vector<16x96xf32> to vector<16x32xf32>
    %40 = tpu.concatenate %38, %38, %38, %38 in 1 : vector<32x16xf32>, vector<32x16xf32>, vector<32x16xf32>, vector<32x16xf32> -> vector<32x64xf32>
    %41 = arith.mulf %40, %4 : vector<32x64xf32>
    %42 = tpu.concatenate %39, %39, %39, %39 in 0 : vector<16x32xf32>, vector<16x32xf32>, vector<16x32xf32>, vector<16x32xf32> -> vector<64x32xf32>
    %43 = arith.mulf %42, %8 : vector<64x32xf32>
    %cst_35 = arith.constant dense<0.000000e+00> : vector<16x64xf32>
    %44 = tpu.matmul %36, %41, %cst_35 {dimension_numbers = #tpu.dot_dimension_numbers<[1], [0], [0], [1], [0, 0, 1, 1], [], []>} : vector<16x32xf32>, vector<32x64xf32>, vector<16x64xf32> -> vector<16x64xf32>
    %cst_36 = arith.constant dense<0xFF800000> : vector<16xf32>
    %45 = vector.multi_reduction <maximumf>, %44, %cst_36 [1] : vector<16x64xf32> to vector<16xf32>
    %46 = vector.shape_cast %45 : vector<16xf32> to vector<16x1xf32>
    %47 = vector.broadcast %46 : vector<16x1xf32> to vector<16x64xf32>
    %48 = arith.subf %44, %47 : vector<16x64xf32>
    %49 = math.exp %48 : vector<16x64xf32>
    %cst_37 = arith.constant dense<0.000000e+00> : vector<16x64xf32>
    %50 = tpu.matmul %49, %2, %cst_37 {dimension_numbers = #tpu.dot_dimension_numbers<[1], [0], [0], [1], [0, 0, 1, 1], [], []>} : vector<16x64xf32>, vector<64x64xf32>, vector<16x64xf32> -> vector<16x64xf32>
    %51 = tpu.reciprocal %50 {approx = true} : vector<16x64xf32> -> vector<16x64xf32>
    %52 = arith.mulf %49, %51 : vector<16x64xf32>
    %53 = arith.mulf %52, %6 : vector<16x64xf32>
    %cst_38 = arith.constant dense<0.000000e+00> : vector<16x32xf32>
    %54 = tpu.matmul %53, %43, %cst_38 {dimension_numbers = #tpu.dot_dimension_numbers<[1], [0], [0], [1], [0, 0, 1, 1], [], []>} : vector<16x64xf32>, vector<64x32xf32>, vector<16x32xf32> -> vector<16x32xf32>
    %cst_39 = arith.constant dense<0.000000e+00> : vector<16x32xf32>
    %55 = tpu.matmul %54, %12, %cst_39 {dimension_numbers = #tpu.dot_dimension_numbers<[1], [0], [0], [1], [0, 0, 1, 1], [], []>} : vector<16x32xf32>, vector<32x32xf32>, vector<16x32xf32> -> vector<16x32xf32>
    %56 = vector.broadcast %22 : vector<1x32xf32> to vector<16x32xf32>
    %57 = arith.addf %55, %56 : vector<16x32xf32>
    %58 = arith.addf %57, %0 : vector<16x32xf32>
    %cst_40 = arith.constant dense<0.000000e+00> : vector<16xf32>
    %59 = vector.multi_reduction <add>, %58, %cst_40 [1] : vector<16x32xf32> to vector<16xf32>
    %60 = vector.shape_cast %59 : vector<16xf32> to vector<16x1xf32>
    %cst_41 = arith.constant 3.200000e+01 : f32
    %61 = vector.broadcast %cst_41 : f32 to vector<16x1xf32>
    %62 = arith.divf %60, %61 : vector<16x1xf32>
    %63 = arith.mulf %58, %58 : vector<16x32xf32>
    %cst_42 = arith.constant dense<0.000000e+00> : vector<16xf32>
    %64 = vector.multi_reduction <add>, %63, %cst_42 [1] : vector<16x32xf32> to vector<16xf32>
    %65 = vector.shape_cast %64 : vector<16xf32> to vector<16x1xf32>
    %cst_43 = arith.constant 3.200000e+01 : f32
    %66 = vector.broadcast %cst_43 : f32 to vector<16x1xf32>
    %67 = arith.divf %65, %66 : vector<16x1xf32>
    %68 = vector.broadcast %62 : vector<16x1xf32> to vector<16x32xf32>
    %69 = arith.subf %58, %68 : vector<16x32xf32>
    %70 = arith.mulf %62, %62 : vector<16x1xf32>
    %71 = arith.subf %67, %70 : vector<16x1xf32>
    %cst_44 = arith.constant 9.99999974E-6 : f32
    %72 = vector.broadcast %cst_44 : f32 to vector<16x1xf32>
    %73 = arith.addf %71, %72 : vector<16x1xf32>
    %74 = math.rsqrt %73 : vector<16x1xf32>
    %75 = vector.broadcast %74 : vector<16x1xf32> to vector<16x32xf32>
    %76 = arith.mulf %69, %75 : vector<16x32xf32>
    %77 = vector.broadcast %24 : vector<1x32xf32> to vector<16x32xf32>
    %78 = arith.mulf %76, %77 : vector<16x32xf32>
    %79 = vector.broadcast %26 : vector<1x32xf32> to vector<16x32xf32>
    %80 = arith.addf %78, %79 : vector<16x32xf32>
    %cst_45 = arith.constant dense<0.000000e+00> : vector<16x64xf32>
    %81 = tpu.matmul %80, %14, %cst_45 {dimension_numbers = #tpu.dot_dimension_numbers<[1], [0], [0], [1], [0, 0, 1, 1], [], []>} : vector<16x32xf32>, vector<32x64xf32>, vector<16x64xf32> -> vector<16x64xf32>
    %82 = vector.broadcast %20 : vector<1x64xf32> to vector<16x64xf32>
    %83 = arith.addf %81, %82 : vector<16x64xf32>
    %cst_46 = arith.constant 0.000000e+00 : f32
    %84 = vector.broadcast %cst_46 : f32 to vector<16x64xf32>
    %85 = arith.maximumf %83, %84 : vector<16x64xf32>
    %cst_47 = arith.constant dense<0.000000e+00> : vector<16x32xf32>
    %86 = tpu.matmul %85, %16, %cst_47 {dimension_numbers = #tpu.dot_dimension_numbers<[1], [0], [0], [1], [0, 0, 1, 1], [], []>} : vector<16x64xf32>, vector<64x32xf32>, vector<16x32xf32> -> vector<16x32xf32>
    %87 = vector.broadcast %28 : vector<1x32xf32> to vector<16x32xf32>
    %88 = arith.addf %86, %87 : vector<16x32xf32>
    %89 = arith.addf %88, %80 : vector<16x32xf32>
    %cst_48 = arith.constant dense<0.000000e+00> : vector<16xf32>
    %90 = vector.multi_reduction <add>, %89, %cst_48 [1] : vector<16x32xf32> to vector<16xf32>
    %91 = vector.shape_cast %90 : vector<16xf32> to vector<16x1xf32>
    %cst_49 = arith.constant 3.200000e+01 : f32
    %92 = vector.broadcast %cst_49 : f32 to vector<16x1xf32>
    %93 = arith.divf %91, %92 : vector<16x1xf32>
    %94 = arith.mulf %89, %89 : vector<16x32xf32>
    %cst_50 = arith.constant dense<0.000000e+00> : vector<16xf32>
    %95 = vector.multi_reduction <add>, %94, %cst_50 [1] : vector<16x32xf32> to vector<16xf32>
    %96 = vector.shape_cast %95 : vector<16xf32> to vector<16x1xf32>
    %cst_51 = arith.constant 3.200000e+01 : f32
    %97 = vector.broadcast %cst_51 : f32 to vector<16x1xf32>
    %98 = arith.divf %96, %97 : vector<16x1xf32>
    %99 = vector.broadcast %93 : vector<16x1xf32> to vector<16x32xf32>
    %100 = arith.subf %89, %99 : vector<16x32xf32>
    %101 = arith.mulf %93, %93 : vector<16x1xf32>
    %102 = arith.subf %98, %101 : vector<16x1xf32>
    %cst_52 = arith.constant 9.99999974E-6 : f32
    %103 = vector.broadcast %cst_52 : f32 to vector<16x1xf32>
    %104 = arith.addf %102, %103 : vector<16x1xf32>
    %105 = math.rsqrt %104 : vector<16x1xf32>
    %106 = vector.broadcast %105 : vector<16x1xf32> to vector<16x32xf32>
    %107 = arith.mulf %100, %106 : vector<16x32xf32>
    %108 = vector.broadcast %30 : vector<1x32xf32> to vector<16x32xf32>
    %109 = arith.mulf %107, %108 : vector<16x32xf32>
    %110 = vector.broadcast %32 : vector<1x32xf32> to vector<16x32xf32>
    %111 = arith.addf %109, %110 : vector<16x32xf32>
    %c1_53 = arith.constant 1 : index
    %c0_54 = arith.constant 0 : index
    %c0_55 = arith.constant 0 : index
    %112 = vector.load %arg1[%c1_53, %c0_54, %c0_55] : memref<2x168x96xf32, #tpu.memory_space<vmem>>, vector<1x32x96xf32>
    %113 = vector.shape_cast %112 : vector<1x32x96xf32> to vector<32x96xf32>
    %c1_56 = arith.constant 1 : index
    %c32_57 = arith.constant 32 : index
    %c0_58 = arith.constant 0 : index
    %114 = vector.load %arg1[%c1_56, %c32_57, %c0_58] : memref<2x168x96xf32, #tpu.memory_space<vmem>>, vector<1x32x32xf32>
    %115 = vector.shape_cast %114 : vector<1x32x32xf32> to vector<32x32xf32>
    %c1_59 = arith.constant 1 : index
    %c64_60 = arith.constant 64 : index
    %c0_61 = arith.constant 0 : index
    %116 = vector.load %arg1[%c1_59, %c64_60, %c0_61] : memref<2x168x96xf32, #tpu.memory_space<vmem>>, vector<1x32x64xf32>
    %117 = vector.shape_cast %116 : vector<1x32x64xf32> to vector<32x64xf32>
    %c1_62 = arith.constant 1 : index
    %c96_63 = arith.constant 96 : index
    %c0_64 = arith.constant 0 : index
    %118 = vector.load %arg1[%c1_62, %c96_63, %c0_64] : memref<2x168x96xf32, #tpu.memory_space<vmem>>, vector<1x64x32xf32>
    %119 = vector.shape_cast %118 : vector<1x64x32xf32> to vector<64x32xf32>
    %c1_65 = arith.constant 1 : index
    %c160_66 = arith.constant 160 : index
    %c0_67 = arith.constant 0 : index
    %120 = vector.load %arg1[%c1_65, %c160_66, %c0_67] : memref<2x168x96xf32, #tpu.memory_space<vmem>>, vector<1x1x96xf32>
    %121 = vector.shape_cast %120 : vector<1x1x96xf32> to vector<1x96xf32>
    %c1_68 = arith.constant 1 : index
    %c161_69 = arith.constant 161 : index
    %c0_70 = arith.constant 0 : index
    %122 = vector.load %arg1[%c1_68, %c161_69, %c0_70] : memref<2x168x96xf32, #tpu.memory_space<vmem>>, vector<1x1x64xf32>
    %123 = vector.shape_cast %122 : vector<1x1x64xf32> to vector<1x64xf32>
    %c1_71 = arith.constant 1 : index
    %c162_72 = arith.constant 162 : index
    %c0_73 = arith.constant 0 : index
    %124 = vector.load %arg1[%c1_71, %c162_72, %c0_73] : memref<2x168x96xf32, #tpu.memory_space<vmem>>, vector<1x1x32xf32>
    %125 = vector.shape_cast %124 : vector<1x1x32xf32> to vector<1x32xf32>
    %c1_74 = arith.constant 1 : index
    %c163_75 = arith.constant 163 : index
    %c0_76 = arith.constant 0 : index
    %126 = vector.load %arg1[%c1_74, %c163_75, %c0_76] : memref<2x168x96xf32, #tpu.memory_space<vmem>>, vector<1x1x32xf32>
    %127 = vector.shape_cast %126 : vector<1x1x32xf32> to vector<1x32xf32>
    %c1_77 = arith.constant 1 : index
    %c164_78 = arith.constant 164 : index
    %c0_79 = arith.constant 0 : index
    %128 = vector.load %arg1[%c1_77, %c164_78, %c0_79] : memref<2x168x96xf32, #tpu.memory_space<vmem>>, vector<1x1x32xf32>
    %129 = vector.shape_cast %128 : vector<1x1x32xf32> to vector<1x32xf32>
    %c1_80 = arith.constant 1 : index
    %c165_81 = arith.constant 165 : index
    %c0_82 = arith.constant 0 : index
    %130 = vector.load %arg1[%c1_80, %c165_81, %c0_82] : memref<2x168x96xf32, #tpu.memory_space<vmem>>, vector<1x1x32xf32>
    %131 = vector.shape_cast %130 : vector<1x1x32xf32> to vector<1x32xf32>
    %c1_83 = arith.constant 1 : index
    %c166_84 = arith.constant 166 : index
    %c0_85 = arith.constant 0 : index
    %132 = vector.load %arg1[%c1_83, %c166_84, %c0_85] : memref<2x168x96xf32, #tpu.memory_space<vmem>>, vector<1x1x32xf32>
    %133 = vector.shape_cast %132 : vector<1x1x32xf32> to vector<1x32xf32>
    %c1_86 = arith.constant 1 : index
    %c167_87 = arith.constant 167 : index
    %c0_88 = arith.constant 0 : index
    %134 = vector.load %arg1[%c1_86, %c167_87, %c0_88] : memref<2x168x96xf32, #tpu.memory_space<vmem>>, vector<1x1x32xf32>
    %135 = vector.shape_cast %134 : vector<1x1x32xf32> to vector<1x32xf32>
    %cst_89 = arith.constant dense<0.000000e+00> : vector<16x96xf32>
    %136 = tpu.matmul %111, %113, %cst_89 {dimension_numbers = #tpu.dot_dimension_numbers<[1], [0], [0], [1], [0, 0, 1, 1], [], []>} : vector<16x32xf32>, vector<32x96xf32>, vector<16x96xf32> -> vector<16x96xf32>
    %137 = vector.broadcast %121 : vector<1x96xf32> to vector<16x96xf32>
    %138 = arith.addf %136, %137 : vector<16x96xf32>
    %139 = vector.extract_strided_slice %138 {offsets = [0, 0], sizes = [16, 32], strides = [1, 1]} : vector<16x96xf32> to vector<16x32xf32>
    %140 = vector.extract_strided_slice %138 {offsets = [0, 32], sizes = [16, 32], strides = [1, 1]} : vector<16x96xf32> to vector<16x32xf32>
    %141 = tpu.transpose %140, [1, 0] : vector<16x32xf32> -> vector<32x16xf32>
    %142 = vector.extract_strided_slice %138 {offsets = [0, 64], sizes = [16, 32], strides = [1, 1]} : vector<16x96xf32> to vector<16x32xf32>
    %143 = tpu.concatenate %141, %141, %141, %141 in 1 : vector<32x16xf32>, vector<32x16xf32>, vector<32x16xf32>, vector<32x16xf32> -> vector<32x64xf32>
    %144 = arith.mulf %143, %4 : vector<32x64xf32>
    %145 = tpu.concatenate %142, %142, %142, %142 in 0 : vector<16x32xf32>, vector<16x32xf32>, vector<16x32xf32>, vector<16x32xf32> -> vector<64x32xf32>
    %146 = arith.mulf %145, %8 : vector<64x32xf32>
    %cst_90 = arith.constant dense<0.000000e+00> : vector<16x64xf32>
    %147 = tpu.matmul %139, %144, %cst_90 {dimension_numbers = #tpu.dot_dimension_numbers<[1], [0], [0], [1], [0, 0, 1, 1], [], []>} : vector<16x32xf32>, vector<32x64xf32>, vector<16x64xf32> -> vector<16x64xf32>
    %cst_91 = arith.constant dense<0xFF800000> : vector<16xf32>
    %148 = vector.multi_reduction <maximumf>, %147, %cst_91 [1] : vector<16x64xf32> to vector<16xf32>
    %149 = vector.shape_cast %148 : vector<16xf32> to vector<16x1xf32>
    %150 = vector.broadcast %149 : vector<16x1xf32> to vector<16x64xf32>
    %151 = arith.subf %147, %150 : vector<16x64xf32>
    %152 = math.exp %151 : vector<16x64xf32>
    %cst_92 = arith.constant dense<0.000000e+00> : vector<16x64xf32>
    %153 = tpu.matmul %152, %2, %cst_92 {dimension_numbers = #tpu.dot_dimension_numbers<[1], [0], [0], [1], [0, 0, 1, 1], [], []>} : vector<16x64xf32>, vector<64x64xf32>, vector<16x64xf32> -> vector<16x64xf32>
    %154 = tpu.reciprocal %153 {approx = true} : vector<16x64xf32> -> vector<16x64xf32>
    %155 = arith.mulf %152, %154 : vector<16x64xf32>
    %156 = arith.mulf %155, %6 : vector<16x64xf32>
    %cst_93 = arith.constant dense<0.000000e+00> : vector<16x32xf32>
    %157 = tpu.matmul %156, %146, %cst_93 {dimension_numbers = #tpu.dot_dimension_numbers<[1], [0], [0], [1], [0, 0, 1, 1], [], []>} : vector<16x64xf32>, vector<64x32xf32>, vector<16x32xf32> -> vector<16x32xf32>
    %cst_94 = arith.constant dense<0.000000e+00> : vector<16x32xf32>
    %158 = tpu.matmul %157, %115, %cst_94 {dimension_numbers = #tpu.dot_dimension_numbers<[1], [0], [0], [1], [0, 0, 1, 1], [], []>} : vector<16x32xf32>, vector<32x32xf32>, vector<16x32xf32> -> vector<16x32xf32>
    %159 = vector.broadcast %125 : vector<1x32xf32> to vector<16x32xf32>
    %160 = arith.addf %158, %159 : vector<16x32xf32>
    %161 = arith.addf %160, %111 : vector<16x32xf32>
    %cst_95 = arith.constant dense<0.000000e+00> : vector<16xf32>
    %162 = vector.multi_reduction <add>, %161, %cst_95 [1] : vector<16x32xf32> to vector<16xf32>
    %163 = vector.shape_cast %162 : vector<16xf32> to vector<16x1xf32>
    %cst_96 = arith.constant 3.200000e+01 : f32
    %164 = vector.broadcast %cst_96 : f32 to vector<16x1xf32>
    %165 = arith.divf %163, %164 : vector<16x1xf32>
    %166 = arith.mulf %161, %161 : vector<16x32xf32>
    %cst_97 = arith.constant dense<0.000000e+00> : vector<16xf32>
    %167 = vector.multi_reduction <add>, %166, %cst_97 [1] : vector<16x32xf32> to vector<16xf32>
    %168 = vector.shape_cast %167 : vector<16xf32> to vector<16x1xf32>
    %cst_98 = arith.constant 3.200000e+01 : f32
    %169 = vector.broadcast %cst_98 : f32 to vector<16x1xf32>
    %170 = arith.divf %168, %169 : vector<16x1xf32>
    %171 = vector.broadcast %165 : vector<16x1xf32> to vector<16x32xf32>
    %172 = arith.subf %161, %171 : vector<16x32xf32>
    %173 = arith.mulf %165, %165 : vector<16x1xf32>
    %174 = arith.subf %170, %173 : vector<16x1xf32>
    %cst_99 = arith.constant 9.99999974E-6 : f32
    %175 = vector.broadcast %cst_99 : f32 to vector<16x1xf32>
    %176 = arith.addf %174, %175 : vector<16x1xf32>
    %177 = math.rsqrt %176 : vector<16x1xf32>
    %178 = vector.broadcast %177 : vector<16x1xf32> to vector<16x32xf32>
    %179 = arith.mulf %172, %178 : vector<16x32xf32>
    %180 = vector.broadcast %127 : vector<1x32xf32> to vector<16x32xf32>
    %181 = arith.mulf %179, %180 : vector<16x32xf32>
    %182 = vector.broadcast %129 : vector<1x32xf32> to vector<16x32xf32>
    %183 = arith.addf %181, %182 : vector<16x32xf32>
    %cst_100 = arith.constant dense<0.000000e+00> : vector<16x64xf32>
    %184 = tpu.matmul %183, %117, %cst_100 {dimension_numbers = #tpu.dot_dimension_numbers<[1], [0], [0], [1], [0, 0, 1, 1], [], []>} : vector<16x32xf32>, vector<32x64xf32>, vector<16x64xf32> -> vector<16x64xf32>
    %185 = vector.broadcast %123 : vector<1x64xf32> to vector<16x64xf32>
    %186 = arith.addf %184, %185 : vector<16x64xf32>
    %cst_101 = arith.constant 0.000000e+00 : f32
    %187 = vector.broadcast %cst_101 : f32 to vector<16x64xf32>
    %188 = arith.maximumf %186, %187 : vector<16x64xf32>
    %cst_102 = arith.constant dense<0.000000e+00> : vector<16x32xf32>
    %189 = tpu.matmul %188, %119, %cst_102 {dimension_numbers = #tpu.dot_dimension_numbers<[1], [0], [0], [1], [0, 0, 1, 1], [], []>} : vector<16x64xf32>, vector<64x32xf32>, vector<16x32xf32> -> vector<16x32xf32>
    %190 = vector.broadcast %131 : vector<1x32xf32> to vector<16x32xf32>
    %191 = arith.addf %189, %190 : vector<16x32xf32>
    %192 = arith.addf %191, %183 : vector<16x32xf32>
    %cst_103 = arith.constant dense<0.000000e+00> : vector<16xf32>
    %193 = vector.multi_reduction <add>, %192, %cst_103 [1] : vector<16x32xf32> to vector<16xf32>
    %194 = vector.shape_cast %193 : vector<16xf32> to vector<16x1xf32>
    %cst_104 = arith.constant 3.200000e+01 : f32
    %195 = vector.broadcast %cst_104 : f32 to vector<16x1xf32>
    %196 = arith.divf %194, %195 : vector<16x1xf32>
    %197 = arith.mulf %192, %192 : vector<16x32xf32>
    %cst_105 = arith.constant dense<0.000000e+00> : vector<16xf32>
    %198 = vector.multi_reduction <add>, %197, %cst_105 [1] : vector<16x32xf32> to vector<16xf32>
    %199 = vector.shape_cast %198 : vector<16xf32> to vector<16x1xf32>
    %cst_106 = arith.constant 3.200000e+01 : f32
    %200 = vector.broadcast %cst_106 : f32 to vector<16x1xf32>
    %201 = arith.divf %199, %200 : vector<16x1xf32>
    %202 = vector.broadcast %196 : vector<16x1xf32> to vector<16x32xf32>
    %203 = arith.subf %192, %202 : vector<16x32xf32>
    %204 = arith.mulf %196, %196 : vector<16x1xf32>
    %205 = arith.subf %201, %204 : vector<16x1xf32>
    %cst_107 = arith.constant 9.99999974E-6 : f32
    %206 = vector.broadcast %cst_107 : f32 to vector<16x1xf32>
    %207 = arith.addf %205, %206 : vector<16x1xf32>
    %208 = math.rsqrt %207 : vector<16x1xf32>
    %209 = vector.broadcast %208 : vector<16x1xf32> to vector<16x32xf32>
    %210 = arith.mulf %203, %209 : vector<16x32xf32>
    %211 = vector.broadcast %133 : vector<1x32xf32> to vector<16x32xf32>
    %212 = arith.mulf %210, %211 : vector<16x32xf32>
    %213 = vector.broadcast %135 : vector<1x32xf32> to vector<16x32xf32>
    %214 = arith.addf %212, %213 : vector<16x32xf32>
    %c4 = arith.constant 4 : index
    %c0_108 = arith.constant 0 : index
    %c0_109 = arith.constant 0 : index
    %215 = vector.load %arg2[%c4, %c0_108, %c0_109] : memref<5x64x64xf32, #tpu.memory_space<vmem>>, vector<1x2x16xf32>
    %216 = vector.shape_cast %215 : vector<1x2x16xf32> to vector<2x16xf32>
    %c4_110 = arith.constant 4 : index
    %c8 = arith.constant 8 : index
    %c0_111 = arith.constant 0 : index
    %217 = vector.load %arg2[%c4_110, %c8, %c0_111] : memref<5x64x64xf32, #tpu.memory_space<vmem>>, vector<1x32x16xf32>
    %218 = vector.shape_cast %217 : vector<1x32x16xf32> to vector<32x16xf32>
    %c4_112 = arith.constant 4 : index
    %c40 = arith.constant 40 : index
    %c0_113 = arith.constant 0 : index
    %219 = vector.load %arg2[%c4_112, %c40, %c0_113] : memref<5x64x64xf32, #tpu.memory_space<vmem>>, vector<1x1x16xf32>
    %220 = vector.shape_cast %219 : vector<1x1x16xf32> to vector<1x16xf32>
    %cst_114 = arith.constant dense<0.000000e+00> : vector<2x32xf32>
    %221 = tpu.matmul %216, %214, %cst_114 {dimension_numbers = #tpu.dot_dimension_numbers<[1], [0], [0], [1], [0, 0, 1, 1], [], []>} : vector<2x16xf32>, vector<16x32xf32>, vector<2x32xf32> -> vector<2x32xf32>
    %cst_115 = arith.constant dense<0.000000e+00> : vector<2x16xf32>
    %222 = tpu.matmul %221, %218, %cst_115 {dimension_numbers = #tpu.dot_dimension_numbers<[1], [0], [0], [1], [0, 0, 1, 1], [], []>} : vector<2x32xf32>, vector<32x16xf32>, vector<2x16xf32> -> vector<2x16xf32>
    %223 = vector.broadcast %220 : vector<1x16xf32> to vector<2x16xf32>
    %224 = arith.addf %222, %223 : vector<2x16xf32>
    %c0_116 = arith.constant 0 : index
    %c0_117 = arith.constant 0 : index
    %225 = vector.load %arg3[%c0_116, %c0_117] : memref<2x16xf32, #tpu.memory_space<vmem>>, vector<2x16xf32>
    tpu.vector_store %arg3[%c0_116, %c0_117], %224 {strides = array<i32>} : memref<2x16xf32, #tpu.memory_space<vmem>>, vector<2x16xf32>,
    return
  }
}

</mosaic_0001>

<bundles_post_ra>
// kernel: self_attn_model_pallas.1
= control target key start
LH: loop header
LB: loop body
LE: loop exit
PB: predicated region body
PF: predicated region fallthrough
CT: control target
= control target key end

     0   :  { %8 = vsyncpa [#allocation3], 0  ;;  %s3164_s0 = inlined_call_operand.vmem [shape: f32[16,32], index: 0, kind: input, shape index: {}]   ;;  %s3165_s1 = inlined_call_operand.vmem [shape: f32[2,168,96], index: 1, kind: input, shape index: {}]   ;;  %s3166_s2 = inlined_call_operand.hbm [shape: f32[5,64,64], index: 2, kind: input, shape index: {}]   ;;  %s3167_s3 = inlined_call_operand.hbm [shape: f32[2,16], index: 3, kind: output, shape index: {}]  }
   0x1   :  { %9 = vsyncpa [#allocation4], 0  ;;  %s2686_s12 = smov [#allocation2]   ;;  %s2638_s16 = scalar_lea.hbm %s3166_s2, 5120 }
   0x2   :  { %s19_s13 = sshll.u32 %s2686_s12, 4  ;;  %p2639_p0 = scmp.ne.s32.totalorder %s3166_s2, %s2638_s16  ;;  %s20_s13 = int_to_ptr.vmem [resolvable:$true] %s19_s13 }
   0x3   :  { %p2642_p1 = scmp.lt.u32.totalorder %s2638_s16, %s3166_s2 }
   0x5   :  { %p2644_p2 = pnand %p2642_p1, %p2639_p0 }
   0x7   :  { %2647 = shalt.err (!%p2644_p2)
}
   0x8   :  { %s2648_s21 = scalar_lea.vmem %s20_s13, 5120  ;;  %p2653_p4 = scmp.lt.s32.totalorder %s20_s13, %s20_s13 }
   0x9   :  { %p2649_p3 = scmp.ne.s32.totalorder %s20_s13, %s2648_s21  ;;  %p2654_p5 = scmp.lt.s32.totalorder %s2648_s21, %s2648_s21 }
   0xb   :  { %p2655_p6 = por %p2654_p5, %p2653_p4 }
   0xd   :  { %p2656_p7 = pnand %p2655_p6, %p2649_p3 }
   0xf   :  { %2659 = shalt.err (!%p2656_p7)
}
  0x10   :  { %s2687_s22 = smov 128   ;;  %s2688_s23 = smov 8  }
  0x11   :  { %25 = dma.hbm_to_vmem [thread:$0]  %s3166_s2, 5120, %s20_s13, [#allocation3], %s2687_s22, %s2687_s22, %s2688_s23  }
  0x12   :  { %2682 = dma.done.wait [#allocation3], 5120  }
  0x13   :  { %2683 = vsyncadd [#allocation3], 4294962176  ;;  %vm88_vm0 = vcmask 261120   ;;  %v56_v0 = vld [vmem:[%s3165_s1] sm:$0xff]  ;;  %v57_v1 = vld [vmem:[%s3165_s1 + $0x8] sm:$0xff]  ;;  %s2689_s12 = smov 96  }
  0x14   :  { %v58_v2 = vld [vmem:[%s3165_s1 + $0x10] sm:$0xff]  ;;  %v2385_v3 = vpack.c.bf16 %v57_v1, %v56_v0  ;;  %v59_v4 = vld [vmem:[%s3165_s1 + $0x18] sm:$0xff]  ;;  %v2745_v5 = vld [vmem:[%s3164_s0] sm:$0xff]  ;;  %s2691_s13 = smov 32   ;;  %s2692_s14 = smov 48   ;;  %vm250_vm1 = vcmask 130048  }
  0x15   :  { %v2389_v6 = vpack.c.bf16 %v59_v4, %v58_v2  ;;  %2173 = vmatprep.mubr.msk.f32.mxu0 %vm88_vm0, %v2745_v5  ;;  %v2752_v7 = vld [vmem:[%s3164_s0 + $0x8] sm:$0xff]  ;;  %v1974_v8 = vld [vmem:[%s3165_s1 + $0xa0] ss:$0 sm:$0xff]  ;;  %s2690_s0 = smov 16   ;;  %vm259_vm2 = vcmask 392192   ;;  %v2796_v44 = vld [vmem:[#allocation2 + $0x58] sm:$0xff] }
  0x16   :  { %2386 = vmatprep.subr.bf16.mxu0 %v2385_v3  ;;  %v2784_v27 = vld [vmem:[#allocation2 + $0x40] sm:$0xff]  ;;  %v2787_v29 = vld [vmem:[#allocation2 + $0x48] sm:$0xff]  ;;  %v2799_v46 = vld [vmem:[#allocation2 + $0x50] sm:$0xff]  ;;  %vm387_vm3 = vcmask 523264   ;;  %s2693_s15 = smov 64   ;;  %vm2695_vm4 = vmmov 0  }
  0x17   :  { %2388 = vmatpush3.bf16.msra.mxu0 %v2385_v3  ;;  %v31_v57 = vld [vmem:[#allocation2] sm:$0xff]  ;;  %v32_v58 = vld [vmem:[#allocation2 + $0x8] sm:$0xff]  ;;  %v33_v61 = vld [vmem:[#allocation2 + $0x10] sm:$0xff]  ;;  %vm1957_vm5 = vcmask 123904  }
  0x18   :  { %2390 = vmatprep.subr.bf16.mxu0 %v2389_v6  ;;  %v2809_v59 = vpack.c.bf16 %v32_v58, %v31_v57  ;;  %v49_v60 = vld [vmem:[#allocation2 + $0xc8] sm:$0xff]  ;;  %v34_v62 = vld [vmem:[#allocation2 + $0x18] sm:$0xff]  ;;  %v48_v1 = vld [vmem:[#allocation2 + $0xc0] sm:$0xff] }
  0x19   :  { %v2814_v63 = vpack.c.bf16 %v34_v62, %v33_v61  ;;  %v51_v0 = vld [vmem:[#allocation2 + $0xd8] sm:$0xff]  ;;  %v35_v2 = vld [vmem:[#allocation2 + $0x20] sm:$0xff]  ;;  %v36_v3 = vld [vmem:[#allocation2 + $0x28] sm:$0xff] }
  0x1a   :  { %v2819_v4 = vpack.c.bf16 %v36_v3, %v35_v2 }
  0x1b   :  { %2392 = vmatpush3.bf16.msra.mxu0 %v2389_v6  ;;  %v53_v6 = vld [vmem:[#allocation2 + $0xe8] sm:$0xff] }
  0x1c   :  { %2402 = vmatprep.subr.bf16.mxu0 %v2809_v59 }
  0x1e   :  { %2174 = vmatmul.mubr.msk.f32.vlgmr.msra.gmra.mrb[0].mxu0 %vm88_vm0, %v2752_v7 }
  0x1f   :  { %2404 = vmatpush3.bf16.msra.mxu0 %v2809_v59 }
  0x20   :  { %2406 = vmatprep.subr.bf16.mxu0 %v2814_v63 }
  0x23   :  { %2408 = vmatpush3.bf16.msra.mxu0 %v2814_v63 }
  0x24   :  { %2410 = vmatprep.subr.bf16.mxu0 %v2819_v4 }
  0x27   :  { %2412 = vmatpush3.bf16.msra.mxu0 %v2819_v4 }
  0xf1   :  { %v2175_v9 = vpop.f32.mrb[0].mxu0 }
  0xf2   :  { %v161_v10 = vpop.f32.mrb[1].mxu0  ;;  %v2765_v12 = vadd.f32 %v2175_v9, %v1974_v8  ;;  %v37_v9 = vld [vmem:[#allocation2 + $0x30] sm:$0xff] }
  0xf3   :  { %v2759_v11 = vadd.f32 %v1974_v8, %v161_v10  ;;  %v50_v8 = vld [vmem:[#allocation2 + $0xd0] sm:$0xff]  ;;  %v38_v10 = vld [vmem:[#allocation2 + $0x38] sm:$0xff] }
  0xf5   :  { %172 = vrot.lane.b32.xlu0 %v2759_v11, %s2689_s12  ;;  %2184 = vmatprep.mubr.msk.f32.mxu1 %vm88_vm0, %v2759_v11 }
  0xf9   :  { %174 = vrot.lane.b32.xlu0 %v2765_v12, %s2689_s12 }
 0x167   :  { %v173_v13 = vpop.permute.xlu0 %172 }
 0x168   :  { %178 = vxpose.xlu1.b32.start [1/2] (short) (narrow) %v173_v13, 32  ;;  %v2825_v13 = vpack.c.bf16 %v38_v10, %v37_v9 }
 0x16a   :  { %2414 = vmatprep.subr.bf16.mxu0 %v2825_v13 }
 0x16b   :  { %v175_v14 = vpop.permute.xlu0 %174  ;;  %2416 = vmatpush3.bf16.msra.mxu0 %v2825_v13 }
 0x16c   :  { %179 = vxpose.xlu1.b32.end [2/2] (short) (narrow) %v175_v14, 32  ;;  %v55_v14 = vld [vmem:[#allocation2 + $0xf8] sm:$0xff] }
 0x1e8   :  { %v194_v15 = vpop.trf.xlu1 }
 0x1e9   :  { %214 = vrot.lane.b32.xlu0 %v194_v15, %s2690_s0 }
 0x1ec   :  { %v195_v16 = vpop.trf.xlu1 }
 0x1ed   :  { %226 = vrot.lane.b32.xlu0 %v194_v15, %s2691_s13  ;;  %216 = vrot.lane.b32.xlu1 %v195_v16, %s2690_s0 }
 0x1f0   :  { %v196_v17 = vpop.trf.xlu1 }
 0x1f1   :  { %238 = vrot.lane.b32.xlu0 %v194_v15, %s2692_s14 }
 0x1f4   :  { %v197_v18 = vpop.trf.xlu1 }
 0x1f5   :  { %228 = vrot.lane.b32.xlu0 %v195_v16, %s2691_s13  ;;  %244 = vrot.lane.b32.xlu1 %v197_v18, %s2692_s14 }
 0x1f9   :  { %240 = vrot.lane.b32.xlu0 %v195_v16, %s2692_s14 }
 0x1fd   :  { %218 = vrot.lane.b32.xlu0 %v196_v17, %s2690_s0 }
 0x201   :  { %230 = vrot.lane.b32.xlu0 %v196_v17, %s2691_s13 }
 0x205   :  { %220 = vrot.lane.b32.xlu0 %v197_v18, %s2690_s0 }
 0x209   :  { %232 = vrot.lane.b32.xlu0 %v197_v18, %s2691_s13 }
 0x20d   :  { %242 = vrot.lane.b32.xlu0 %v196_v17, %s2692_s14 }
 0x25b   :  { %v215_v19 = vpop.permute.xlu0 %214 }
 0x25c   :  { %v251_v24 = vsel %vm250_vm1, %v194_v15, %v215_v19  ;;  %v52_v15 = vld [vmem:[#allocation2 + $0xe0] sm:$0xff] }
 0x25f   :  { %v227_v20 = vpop.permute.xlu0 %226  ;;  %v217_v22 = vpop.permute.xlu1 %216 }
 0x260   :  { %v255_v25 = vsel %vm88_vm0, %v251_v24, %v227_v20  ;;  %v252_v26 = vsel %vm250_vm1, %v195_v16, %v217_v22  ;;  %v54_v16 = vld [vmem:[#allocation2 + $0xf0] sm:$0xff] }
 0x263   :  { %v239_v21 = vpop.permute.xlu0 %238 }
 0x264   :  { %v260_v28 = vsel %vm259_vm2, %v255_v25, %v239_v21 }
 0x265   :  { %v264_v33 = vmul.f32 %v260_v28, %v2784_v27 }
 0x267   :  { %v229_v23 = vpop.permute.xlu0 %228  ;;  %v245_v42 = vpop.permute.xlu1 %244 }
 0x268   :  { %v256_v30 = vsel %vm88_vm0, %v252_v26, %v229_v23 }
 0x26b   :  { %v241_v31 = vpop.permute.xlu0 %240 }
 0x26c   :  { %v261_v32 = vsel %vm259_vm2, %v256_v30, %v241_v31 }
 0x26d   :  { %v265_v34 = vmul.f32 %v261_v32, %v2787_v29 }
 0x26f   :  { %v219_v35 = vpop.permute.xlu0 %218  ;;  %v2393_v36 = vpack.c.bf16 %v265_v34, %v264_v33 }
 0x270   :  { %v253_v43 = vsel %vm250_vm1, %v196_v17, %v219_v35 }
 0x271   :  { %2394 = vmatprep.subr.bf16.mxu1 %v2393_v36 }
 0x272   :  { %2396 = vmatpush3.bf16.msra.mxu1 %v2393_v36 }
 0x273   :  { %v231_v37 = vpop.permute.xlu0 %230 }
 0x274   :  { %v257_v47 = vsel %vm88_vm0, %v253_v43, %v231_v37 }
 0x277   :  { %v221_v38 = vpop.permute.xlu0 %220 }
 0x278   :  { %v254_v39 = vsel %vm250_vm1, %v197_v18, %v221_v38 }
 0x27b   :  { %v233_v40 = vpop.permute.xlu0 %232 }
 0x27c   :  { %v258_v41 = vsel %vm88_vm0, %v254_v39, %v233_v40 }
 0x27d   :  { %v263_v45 = vsel %vm259_vm2, %v258_v41, %v245_v42 }
 0x27e   :  { %v267_v50 = vmul.f32 %v263_v45, %v2796_v44 }
 0x27f   :  { %v243_v48 = vpop.permute.xlu0 %242 }
 0x280   :  { %v262_v49 = vsel %vm259_vm2, %v257_v47, %v243_v48 }
 0x281   :  { %v266_v51 = vmul.f32 %v262_v49, %v2799_v46  ;;  %v60_v49 = vld [vmem:[%s3165_s1 + $0x20] sm:$0xff] }
 0x283   :  { %v2397_v52 = vpack.c.bf16 %v267_v50, %v266_v51  ;;  %v62_v50 = vld [vmem:[%s3165_s1 + $0x30] sm:$0xff]  ;;  %v63_v51 = vld [vmem:[%s3165_s1 + $0x38] sm:$0xff] }
 0x285   :  { %2398 = vmatprep.subr.bf16.mxu1 %v2397_v52 }
 0x286   :  { %2400 = vmatpush3.bf16.msra.mxu1 %v2397_v52  ;;  %v2437_v52 = vpack.c.bf16 %v63_v51, %v62_v50 }
 0x289   :  { %2185 = vmatmul.mubr.msk.f32.vlgmr.msra.gmra.mrb[0].mxu1 %vm88_vm0, %v2765_v12 }
 0x35c   :  { %v2186_v53 = vpop.f32.mrb[0].mxu1 }
 0x35d   :  { %v378_v54 = vpop.f32.mrb[1].mxu1  ;;  %v391_v55 = vsel %vm387_vm3, %v2186_v53, -inf }
 0x35e   :  { %392 = vmax.xlane.f32.xlu1 %v391_v55  ;;  %v388_v56 = vsel %vm387_vm3, %v378_v54, -inf }
 0x35f   :  { %389 = vmax.xlane.f32.xlu0 %v388_v56 }
 0x36f   :  { %278 = vrot.lane.b32.xlu1 %v49_v60, %s2693_s15 }
 0x373   :  { %282 = vrot.lane.b32.xlu1 %v51_v0, %s2693_s15 }
 0x375   :  { %276 = vrot.lane.b32.xlu0 %v48_v1, %s2693_s15 }
 0x377   :  { %286 = vrot.lane.b32.xlu1 %v53_v6, %s2693_s15 }
 0x379   :  { %280 = vrot.lane.b32.xlu0 %v50_v8, %s2693_s15 }
 0x37b   :  { %290 = vrot.lane.b32.xlu1 %v55_v14, %s2693_s15 }
 0x37d   :  { %284 = vrot.lane.b32.xlu0 %v52_v15, %s2693_s15 }
 0x381   :  { %288 = vrot.lane.b32.xlu0 %v54_v16, %s2693_s15 }
 0x3eb   :  { %v393_v17 = vpop.xlane.xlu1 %392 }
 0x3ec   :  { %v395_v18 = vsub.f32 %v2186_v53, %v393_v17  ;;  %v390_v19 = vpop.xlane.xlu0 %389 }
 0x3ed   :  { %v394_v20 = vsub.f32 %v378_v54, %v390_v19 }
 0x3ee   :  { %v398_v21 = vmul.f32 1.442695, %v395_v18  ;;  %v2883_v18 = vld [vmem:[#allocation2 + $0x80] sm:$0xff] }
 0x3ef   :  { %v396_v22 = vmul.f32 1.442695, %v394_v20  ;;  %v2833_v23 = vpop.permute.xlu1 %278  ;;  %v2885_v20 = vld [vmem:[#allocation2 + $0x88] sm:$0xff] }
 0x3f0   :  { %v301_v24 = vmul.f32 %v2833_v23, %v2765_v12  ;;  %v2837_v25 = vpop.permute.xlu0 %276 }
 0x3f1   :  { %2606 = vpow2.f32 %v396_v22  ;;  %v300_v26 = vmul.f32 %v2837_v25, %v2759_v11 }
 0x3f2   :  { %2608 = vpow2.f32 %v398_v21 }
 0x3f3   :  { %v2566_v28 = vpack.i.bf16 %v301_v24, %v300_v26  ;;  %v2841_v30 = vpop.permute.xlu1 %282 }
 0x3f4   :  { %v303_v31 = vmul.f32 %v2841_v30, %v2765_v12  ;;  %v2845_v32 = vpop.permute.xlu0 %280 }
 0x3f5   :  { %v302_v33 = vmul.f32 %v2845_v32, %v2759_v11  ;;  %2567 = vrot.lane.b32.xlu0 %v2566_v28, %s2693_s15  ;;  %v1983_v28 = vld [vmem:[%s3165_s1 + $0xa2] ss:$0 sm:$0xff] }
 0x3f7   :  { %v2571_v34 = vpack.i.bf16 %v303_v31, %v302_v33  ;;  %v2850_v35 = vpop.permute.xlu1 %286 }
 0x3f8   :  { %v305_v36 = vmul.f32 %v2850_v35, %v2765_v12  ;;  %v2854_v37 = vpop.permute.xlu0 %284 }
 0x3f9   :  { %v304_v38 = vmul.f32 %v2854_v37, %v2759_v11  ;;  %2572 = vrot.lane.b32.xlu1 %v2571_v34, %s2693_s15 }
 0x3fb   :  { %v2607_v39 = vpop.eup %2606  ;;  %v2576_v40 = vpack.i.bf16 %v305_v36, %v304_v38  ;;  %v2859_v41 = vpop.permute.xlu1 %290 }
 0x3fc   :  { %v2609_v42 = vpop.eup %2608  ;;  %v307_v43 = vmul.f32 %v2859_v41, %v2765_v12  ;;  %2203 = vmatprep.mubr.msk.f32.mxu0 %vm387_vm3, %v2607_v39  ;;  %v2864_v45 = vpop.permute.xlu0 %288  ;;  %v61_v12 = vld [vmem:[%s3165_s1 + $0x28] sm:$0xff] }
 0x3fd   :  { %v306_v47 = vmul.f32 %v2864_v45, %v2759_v11  ;;  %2204 = vmatmul.mubr.msk.f32.vlgmr.msra.gmra.mrb[2].mxu0 %vm387_vm3, %v2609_v42  ;;  %2577 = vrot.lane.b32.xlu0 %v2576_v40, %s2693_s15  ;;  %v2433_v11 = vpack.c.bf16 %v61_v12, %v60_v49  ;;  %v66_v12 = vld [vmem:[%s3165_s1 + $0x50] sm:$0xff] }
 0x3ff   :  { %v2581_v48 = vpack.i.bf16 %v307_v43, %v306_v47  ;;  %2434 = vmatprep.subr.bf16.mxu0 %v2433_v11 }
 0x400   :  { %2436 = vmatpush3.bf16.msra.mxu0 %v2433_v11  ;;  %v67_v11 = vld [vmem:[%s3165_s1 + $0x58] sm:$0xff] }
 0x401   :  { %2582 = vrot.lane.b32.xlu1 %v2581_v48, %s2693_s15  ;;  %2438 = vmatprep.subr.bf16.mxu0 %v2437_v52  ;;  %v2445_v51 = vpack.c.bf16 %v67_v11, %v66_v12 }
 0x404   :  { %2440 = vmatpush3.bf16.msra.mxu0 %v2437_v52  ;;  %v68_v52 = vld [vmem:[%s3165_s1 + $0x60] sm:$0xff] }
 0x467   :  { %v2568_v53 = vpop.permute.xlu0 %2567 }
 0x468   :  { %v2570_v54 = vunpack.i.h.bf16 %v2568_v53  ;;  %v2569_v55 = vunpack.i.l.bf16 %v2568_v53  ;;  %v69_v53 = vld [vmem:[%s3165_s1 + $0x68] sm:$0xff] }
 0x46a   :  { %v2417_v56 = vpack.c.bf16 %v2570_v54, %v2569_v55  ;;  %v70_v54 = vld [vmem:[%s3165_s1 + $0x70] sm:$0xff]  ;;  %v2449_v55 = vpack.c.bf16 %v69_v53, %v68_v52 }
 0x46b   :  { %v2573_v57 = vpop.permute.xlu1 %2572 }
 0x46c   :  { %v2575_v58 = vunpack.i.h.bf16 %v2573_v57  ;;  %v2574_v60 = vunpack.i.l.bf16 %v2573_v57  ;;  %2418 = vmatprep.subr.bf16.mxu1 %v2417_v56  ;;  %2450 = vmatprep.subr.bf16.mxu0 %v2449_v55 }
 0x46d   :  { %2420 = vmatpush3.bf16.msra.mxu1 %v2417_v56  ;;  %v71_v56 = vld [vmem:[%s3165_s1 + $0x78] sm:$0xff] }
 0x46e   :  { %v2421_v61 = vpack.c.bf16 %v2575_v58, %v2574_v60  ;;  %v2453_v57 = vpack.c.bf16 %v71_v56, %v70_v54  ;;  %v72_v58 = vld [vmem:[%s3165_s1 + $0x80] sm:$0xff]  ;;  %v73_v60 = vld [vmem:[%s3165_s1 + $0x88] sm:$0xff] }
 0x46f   :  { %v2578_v62 = vpop.permute.xlu0 %2577 }
 0x470   :  { %v2580_v0 = vunpack.i.h.bf16 %v2578_v62  ;;  %v2579_v1 = vunpack.i.l.bf16 %v2578_v62  ;;  %2422 = vmatprep.subr.bf16.mxu1 %v2421_v61 }
 0x471   :  { %2424 = vmatpush3.bf16.msra.mxu1 %v2421_v61  ;;  %v2457_v61 = vpack.c.bf16 %v73_v60, %v72_v58 }
 0x472   :  { %v2425_v2 = vpack.c.bf16 %v2580_v0, %v2579_v1 }
 0x473   :  { %v2583_v3 = vpop.permute.xlu1 %2582 }
 0x474   :  { %v2585_v6 = vunpack.i.h.bf16 %v2583_v3  ;;  %v2584_v8 = vunpack.i.l.bf16 %v2583_v3  ;;  %2426 = vmatprep.subr.bf16.mxu1 %v2425_v2 }
 0x475   :  { %2428 = vmatpush3.bf16.msra.mxu1 %v2425_v2 }
 0x476   :  { %v2429_v9 = vpack.c.bf16 %v2585_v6, %v2584_v8 }
 0x478   :  { %2430 = vmatprep.subr.bf16.mxu1 %v2429_v9 }
 0x479   :  { %2432 = vmatpush3.bf16.msra.mxu1 %v2429_v9 }
 0x4d0   :  { %v2205_v10 = vpop.f32.mrb[2].mxu0 }
 0x4d1   :  { %2610 = vrcp.f32 %v2205_v10  ;;  %v472_v14 = vpop.f32.mrb[3].mxu0 }
 0x4d2   :  { %2612 = vrcp.f32 %v472_v14 }
 0x4db   :  { %v2611_v15 = vpop.eup %2610 }
 0x4dc   :  { %v2613_v16 = vpop.eup %2612  ;;  %v484_v17 = vmul.f32 %v2611_v15, %v2609_v42 }
 0x4dd   :  { %v483_v19 = vmul.f32 %v2613_v16, %v2607_v39 }
 0x4de   :  { %v486_v22 = vmul.f32 %v484_v17, %v2885_v20 }
 0x4df   :  { %v485_v21 = vmul.f32 %v483_v19, %v2883_v18 }
 0x4e1   :  { %2222 = vmatprep.mubr.msk.f32.mxu1 %vm387_vm3, %v485_v21 }
 0x4e2   :  { %2223 = vmatmul.mubr.msk.f32.vlgmr.msra.gmra.mrb[2].mxu1 %vm387_vm3, %v486_v22 }
 0x5b5   :  { %v2224_v24 = vpop.f32.mrb[2].mxu1 }
 0x5b6   :  { %v591_v26 = vpop.f32.mrb[3].mxu1 }
 0x5b7   :  { %2233 = vmatprep.mubr.msk.f32.mxu0 %vm88_vm0, %v591_v26 }
 0x5b8   :  { %2234 = vmatmul.mubr.msk.f32.vlgmr.msra.gmra.mrb[4].mxu0 %vm88_vm0, %v2224_v24  ;;  %v1986_v24 = vld [vmem:[%s3165_s1 + $0xa3] ss:$0 sm:$0xff] }
 0x5b9   :  { %2452 = vmatpush3.bf16.msra.mxu0 %v2449_v55 }
 0x5ba   :  { %2454 = vmatprep.subr.bf16.mxu0 %v2453_v57 }
 0x5bd   :  { %2456 = vmatpush3.bf16.msra.mxu0 %v2453_v57 }
 0x5be   :  { %2458 = vmatprep.subr.bf16.mxu0 %v2457_v61 }
 0x5c1   :  { %2460 = vmatpush3.bf16.msra.mxu0 %v2457_v61  ;;  %v1996_v61 = vld [vmem:[%s3165_s1 + $0xa8] sm:$0xff] }
 0x68b   :  { %v2235_v31 = vpop.f32.mrb[4].mxu0 }
 0x68c   :  { %v682_v33 = vadd.f32 %v2235_v31, %v1983_v28  ;;  %v676_v34 = vpop.f32.mrb[5].mxu0 }
 0x68d   :  { %v677_v36 = vadd.f32 %v1983_v28, %v676_v34  ;;  %v1987_v28 = vld [vmem:[%s3165_s1 + $0xa4] ss:$0 sm:$0xff] }
 0x68e   :  { %v686_v38 = vadd.f32 %v682_v33, %v2752_v7  ;;  %v64_v7 = vld [vmem:[%s3165_s1 + $0x40] sm:$0xff] }
 0x68f   :  { %v685_v39 = vadd.f32 %v677_v36, %v2745_v5  ;;  %v65_v5 = vld [vmem:[%s3165_s1 + $0x48] sm:$0xff] }
 0x690   :  { %v690_v40 = vsel %vm88_vm0, %v686_v38, 0.0  ;;  %v697_v48 = vmul.f32 %v686_v38, %v686_v38  ;;  %v2441_v50 = vpack.c.bf16 %v65_v5, %v64_v7 }
 0x691   :  { %691 = vadd.xlane.f32.xlu1 %v690_v40  ;;  %v687_v42 = vsel %vm88_vm0, %v685_v39, 0.0  ;;  %v696_v43 = vmul.f32 %v685_v39, %v685_v39 }
 0x692   :  { %688 = vadd.xlane.f32.xlu0 %v687_v42  ;;  %v701_v49 = vsel %vm88_vm0, %v697_v48, 0.0  ;;  %2442 = vmatprep.subr.bf16.mxu1 %v2441_v50 }
 0x693   :  { %v698_v47 = vsel %vm88_vm0, %v696_v43, 0.0  ;;  %2444 = vmatpush3.bf16.msra.mxu1 %v2441_v50 }
 0x694   :  { %2446 = vmatprep.subr.bf16.mxu1 %v2445_v51 }
 0x696   :  { %699 = vadd.xlane.f32.xlu0 %v698_v47  ;;  %v75_v47 = vld [vmem:[%s3165_s1 + $0x98] sm:$0xff] }
 0x697   :  { %2448 = vmatpush3.bf16.msra.mxu1 %v2445_v51  ;;  %v1991_v51 = vld [vmem:[%s3165_s1 + $0xa5] ss:$0 sm:$0xff] }
 0x69a   :  { %702 = vadd.xlane.f32.xlu0 %v701_v49 }
 0x71e   :  { %v692_v1 = vpop.xlane.xlu1 %691 }
 0x71f   :  { %v689_v62 = vpop.xlane.xlu0 %688  ;;  %v695_v3 = vmul.f32 0.03125, %v692_v1 }
 0x720   :  { %v694_v0 = vmul.f32 0.03125, %v689_v62  ;;  %v1997_v62 = vld [vmem:[%s3165_s1 + $0xb0] sm:$0xff] }
 0x721   :  { %v709_v14 = vmul.f32 %v695_v3, %v695_v3  ;;  %v707_v31 = vsub.f32 %v686_v38, %v695_v3  ;;  %v1988_v38 = vld [vmem:[%s3165_s1 + $0xa1] ss:$0 sm:$0xff]  ;;  %v2465_v1 = vpack.c.bf16 %v1997_v62, %v1996_v61 }
 0x722   :  { %v708_v6 = vmul.f32 %v694_v0, %v694_v0  ;;  %v706_v21 = vsub.f32 %v685_v39, %v694_v0  ;;  %v74_v39 = vld [vmem:[%s3165_s1 + $0x90] sm:$0xff]  ;;  %v1998_v0 = vld [vmem:[%s3165_s1 + $0xb8] sm:$0xff] }
 0x723   :  { %v700_v2 = vpop.xlane.xlu0 %699  ;;  %v2461_v48 = vpack.c.bf16 %v75_v47, %v74_v39  ;;  %2466 = vmatprep.subr.bf16.mxu1 %v2465_v1  ;;  %v1995_v39 = vld [vmem:[%s3165_s1 + $0xa7] ss:$0 sm:$0xff] }
 0x724   :  { %v704_v8 = vmul.f32 0.03125, %v700_v2  ;;  %v1999_v2 = vld [vmem:[%s3165_s1 + $0xc0] sm:$0xff] }
 0x725   :  { %2462 = vmatprep.subr.bf16.mxu0 %v2461_v48  ;;  %v2469_v3 = vpack.c.bf16 %v1999_v2, %v1998_v0 }
 0x726   :  { %v710_v9 = vsub.f32 %v704_v8, %v708_v6  ;;  %2464 = vmatpush3.bf16.msra.mxu0 %v2461_v48 }
 0x727   :  { %v703_v10 = vpop.xlane.xlu0 %702  ;;  %2482 = vmatprep.subr.bf16.mxu0 %v2809_v59 }
 0x728   :  { %v712_v15 = vadd.f32 1e-05, %v710_v9  ;;  %v705_v16 = vmul.f32 0.03125, %v703_v10 }
 0x72a   :  { %2614 = vrsqrt.f32 %v712_v15  ;;  %v711_v17 = vsub.f32 %v705_v16, %v709_v14 }
 0x72c   :  { %v713_v19 = vadd.f32 1e-05, %v711_v17 }
 0x72e   :  { %2616 = vrsqrt.f32 %v713_v19 }
 0x734   :  { %v2615_v22 = vpop.eup %2614 }
 0x735   :  { %v716_v26 = vmul.f32 %v2615_v22, %v706_v21 }
 0x737   :  { %v722_v33 = vmul.f32 %v1986_v24, %v716_v26 }
 0x738   :  { %v2617_v34 = vpop.eup %2616 }
 0x739   :  { %v717_v36 = vmul.f32 %v2617_v34, %v707_v31  ;;  %v728_v40 = vadd.f32 %v1987_v28, %v722_v33 }
 0x73b   :  { %v723_v42 = vmul.f32 %v1986_v24, %v717_v36  ;;  %2244 = vmatprep.mubr.msk.f32.mxu1 %vm88_vm0, %v728_v40  ;;  %v1994_v36 = vld [vmem:[%s3165_s1 + $0xa6] ss:$0 sm:$0xff] }
 0x73d   :  { %v729_v43 = vadd.f32 %v1987_v28, %v723_v42 }
 0x73f   :  { %2245 = vmatmul.mubr.msk.f32.vlgmr.msra.gmra.mrb[4].mxu1 %vm88_vm0, %v729_v43 }
 0x740   :  { %2468 = vmatpush3.bf16.msra.mxu1 %v2465_v1 }
 0x741   :  { %2470 = vmatprep.subr.bf16.mxu1 %v2469_v3 }
 0x744   :  { %2472 = vmatpush3.bf16.msra.mxu1 %v2469_v3 }
 0x812   :  { %v2246_v49 = vpop.f32.mrb[4].mxu1 }
 0x813   :  { %v812_v7 = vadd.f32 %v2246_v49, %v1988_v38  ;;  %v806_v5 = vpop.f32.mrb[5].mxu1 }
 0x814   :  { %v807_v12 = vadd.f32 %v1988_v38, %v806_v5 }
 0x815   :  { %v816_v11 = vmax.f32 %v812_v7, 0.0  ;;  %v2024_v7 = vld [vmem:[%s3165_s1 + $0x148] ss:$0 sm:$0xff] }
 0x816   :  { %v815_v50 = vmax.f32 %v807_v12, 0.0 }
 0x818   :  { %2263 = vmatprep.mubr.msk.f32.mxu0 %vm387_vm3, %v815_v50 }
 0x819   :  { %2264 = vmatmul.mubr.msk.f32.vlgmr.msra.gmra.mrb[6].mxu0 %vm387_vm3, %v816_v11 }
 0x81a   :  { %2484 = vmatpush3.bf16.msra.mxu0 %v2809_v59 }
 0x81b   :  { %2486 = vmatprep.subr.bf16.mxu0 %v2814_v63 }
 0x81e   :  { %2488 = vmatpush3.bf16.msra.mxu0 %v2814_v63 }
 0x81f   :  { %2490 = vmatprep.subr.bf16.mxu0 %v2819_v4 }
 0x822   :  { %2492 = vmatpush3.bf16.msra.mxu0 %v2819_v4 }
 0x823   :  { %2494 = vmatprep.subr.bf16.mxu0 %v2825_v13 }
 0x826   :  { %2496 = vmatpush3.bf16.msra.mxu0 %v2825_v13 }
 0x8ec   :  { %v2265_v52 = vpop.f32.mrb[6].mxu0 }
 0x8ed   :  { %v899_v53 = vadd.f32 %v2265_v52, %v1991_v51  ;;  %v893_v54 = vpop.f32.mrb[7].mxu0 }
 0x8ee   :  { %v894_v59 = vadd.f32 %v1991_v51, %v893_v54 }
 0x8ef   :  { %v903_v55 = vadd.f32 %v899_v53, %v729_v43 }
 0x8f0   :  { %v902_v56 = vadd.f32 %v894_v59, %v728_v40 }
 0x8f1   :  { %v907_v63 = vsel %vm88_vm0, %v903_v55, 0.0  ;;  %v913_v57 = vmul.f32 %v903_v55, %v903_v55 }
 0x8f2   :  { %908 = vadd.xlane.f32.xlu0 %v907_v63  ;;  %v904_v4 = vsel %vm88_vm0, %v902_v56, 0.0  ;;  %v912_v58 = vmul.f32 %v902_v56, %v902_v56 }
 0x8f3   :  { %905 = vadd.xlane.f32.xlu1 %v904_v4  ;;  %v917_v13 = vsel %vm88_vm0, %v913_v57, 0.0 }
 0x8f4   :  { %v914_v60 = vsel %vm88_vm0, %v912_v58, 0.0 }
 0x8f6   :  { %918 = vadd.xlane.f32.xlu0 %v917_v13 }
 0x8f7   :  { %915 = vadd.xlane.f32.xlu1 %v914_v60 }
 0x97f   :  { %v909_v6 = vpop.xlane.xlu0 %908 }
 0x980   :  { %v911_v8 = vmul.f32 0.03125, %v909_v6  ;;  %v906_v9 = vpop.xlane.xlu1 %905 }
 0x981   :  { %v910_v10 = vmul.f32 0.03125, %v906_v9 }
 0x982   :  { %v925_v15 = vmul.f32 %v911_v8, %v911_v8  ;;  %v923_v31 = vsub.f32 %v903_v55, %v911_v8 }
 0x983   :  { %v919_v14 = vpop.xlane.xlu0 %918  ;;  %v924_v19 = vmul.f32 %v910_v10, %v910_v10  ;;  %v922_v34 = vsub.f32 %v902_v56, %v910_v10 }
 0x984   :  { %v921_v16 = vmul.f32 0.03125, %v919_v14  ;;  %v916_v17 = vpop.xlane.xlu1 %915 }
 0x985   :  { %v920_v21 = vmul.f32 0.03125, %v916_v17 }
 0x986   :  { %v927_v22 = vsub.f32 %v921_v16, %v925_v15 }
 0x987   :  { %v926_v24 = vsub.f32 %v920_v21, %v924_v19 }
 0x988   :  { %v929_v26 = vadd.f32 1e-05, %v927_v22 }
 0x989   :  { %v928_v28 = vadd.f32 1e-05, %v926_v24 }
 0x98a   :  { %2618 = vrsqrt.f32 %v929_v26 }
 0x98b   :  { %2620 = vrsqrt.f32 %v928_v28 }
 0x994   :  { %v2619_v33 = vpop.eup %2618 }
 0x995   :  { %v2621_v40 = vpop.eup %2620  ;;  %v933_v42 = vmul.f32 %v2619_v33, %v923_v31 }
 0x996   :  { %v932_v43 = vmul.f32 %v2621_v40, %v922_v34 }
 0x997   :  { %v939_v47 = vmul.f32 %v1994_v36, %v933_v42 }
 0x998   :  { %v938_v48 = vmul.f32 %v1994_v36, %v932_v43 }
 0x999   :  { %v2986_v49 = vadd.f32 %v1995_v39, %v939_v47 }
 0x99a   :  { %v2984_v38 = vadd.f32 %v1995_v39, %v938_v48 }
 0x99c   :  { %2274 = vmatprep.mubr.msk.f32.mxu1 %vm88_vm0, %v2984_v38 }
 0x99d   :  { %2275 = vmatmul.mubr.msk.f32.vlgmr.msra.gmra.mrb[6].mxu1 %vm88_vm0, %v2986_v49 }
 0xa70   :  { %v2276_v5 = vpop.f32.mrb[6].mxu1 }
 0xa71   :  { %v2995_v12 = vadd.f32 %v2276_v5, %v2024_v7  ;;  %v1051_v50 = vpop.f32.mrb[7].mxu1 }
 0xa72   :  { %v2997_v11 = vadd.f32 %v2024_v7, %v1051_v50 }
 0xa73   :  { %1064 = vrot.lane.b32.xlu0 %v2995_v12, %s2689_s12  ;;  %v1157_v55 = vmul.f32 %v2995_v12, %v2833_v23  ;;  %v1161_v4 = vmul.f32 %v2995_v12, %v2850_v35  ;;  %v1163_v58 = vmul.f32 %v2995_v12, %v2859_v41 }
 0xa74   :  { %1062 = vrot.lane.b32.xlu1 %v2997_v11, %s2689_s12  ;;  %2285 = vmatprep.mubr.msk.f32.mxu1 %vm88_vm0, %v2997_v11  ;;  %v1156_v59 = vmul.f32 %v2997_v11, %v2837_v25  ;;  %v1160_v57 = vmul.f32 %v2997_v11, %v2854_v37  ;;  %v1162_v23 = vmul.f32 %v2997_v11, %v2864_v45 }
 0xa76   :  { %v2586_v63 = vpack.i.bf16 %v1157_v55, %v1156_v59  ;;  %v2596_v25 = vpack.i.bf16 %v1161_v4, %v1160_v57  ;;  %v2601_v13 = vpack.i.bf16 %v1163_v58, %v1162_v23 }
 0xae5   :  { %v1065_v52 = vpop.permute.xlu0 %1064 }
 0xae6   :  { %v1063_v51 = vpop.permute.xlu1 %1062 }
 0xae7   :  { %1068 = vxpose.xlu1.b32.start [1/2] (short) (narrow) %v1063_v51, 32 }
 0xaeb   :  { %1069 = vxpose.xlu1.b32.end [2/2] (short) (narrow) %v1065_v52, 32 }
 0xb67   :  { %v1084_v53 = vpop.trf.xlu1 }
 0xb68   :  { %1104 = vrot.lane.b32.xlu0 %v1084_v53, %s2690_s0 }
 0xb6b   :  { %v1085_v54 = vpop.trf.xlu1 }
 0xb6c   :  { %1116 = vrot.lane.b32.xlu0 %v1084_v53, %s2691_s13 }
 0xb6f   :  { %v1086_v56 = vpop.trf.xlu1 }
 0xb70   :  { %1128 = vrot.lane.b32.xlu0 %v1084_v53, %s2692_s14  ;;  %1132 = vrot.lane.b32.xlu1 %v1086_v56, %s2692_s14 }
 0xb73   :  { %v1087_v35 = vpop.trf.xlu1 }
 0xb74   :  { %1106 = vrot.lane.b32.xlu0 %v1085_v54, %s2690_s0  ;;  %2587 = vrot.lane.b32.xlu1 %v2586_v63, %s2693_s15 }
 0xb78   :  { %1118 = vrot.lane.b32.xlu0 %v1085_v54, %s2691_s13  ;;  %2597 = vrot.lane.b32.xlu1 %v2596_v25, %s2693_s15 }
 0xb7c   :  { %1130 = vrot.lane.b32.xlu0 %v1085_v54, %s2692_s14  ;;  %2602 = vrot.lane.b32.xlu1 %v2601_v13, %s2693_s15 }
 0xb80   :  { %1108 = vrot.lane.b32.xlu0 %v1086_v56, %s2690_s0 }
 0xb84   :  { %1120 = vrot.lane.b32.xlu0 %v1086_v56, %s2691_s13 }
 0xb88   :  { %1110 = vrot.lane.b32.xlu0 %v1087_v35, %s2690_s0 }
 0xb8c   :  { %1122 = vrot.lane.b32.xlu0 %v1087_v35, %s2691_s13 }
 0xb90   :  { %1134 = vrot.lane.b32.xlu0 %v1087_v35, %s2692_s14 }
 0xbda   :  { %v1105_v37 = vpop.permute.xlu0 %1104 }
 0xbdb   :  { %v1140_v62 = vsel %vm250_vm1, %v1084_v53, %v1105_v37 }
 0xbde   :  { %v1117_v41 = vpop.permute.xlu0 %1116 }
 0xbdf   :  { %v1144_v0 = vsel %vm88_vm0, %v1140_v62, %v1117_v41  ;;  %v2000_v41 = vld [vmem:[%s3165_s1 + $0xc8] sm:$0xff]  ;;  %v2003_v62 = vld [vmem:[%s3165_s1 + $0xe0] sm:$0xff] }
 0xbe2   :  { %v1129_v45 = vpop.permute.xlu0 %1128  ;;  %v1133_v19 = vpop.permute.xlu1 %1132 }
 0xbe3   :  { %v1148_v1 = vsel %vm259_vm2, %v1144_v0, %v1129_v45  ;;  %v2001_v45 = vld [vmem:[%s3165_s1 + $0xd0] sm:$0xff] }
 0xbe4   :  { %v1152_v9 = vmul.f32 %v1148_v1, %v2784_v27 }
 0xbe6   :  { %v1107_v60 = vpop.permute.xlu0 %1106  ;;  %v2588_v26 = vpop.permute.xlu1 %2587 }
 0xbe7   :  { %v1141_v2 = vsel %vm250_vm1, %v1085_v54, %v1107_v60  ;;  %v2590_v34 = vunpack.i.h.bf16 %v2588_v26  ;;  %v2589_v36 = vunpack.i.l.bf16 %v2588_v26  ;;  %v2002_v60 = vld [vmem:[%s3165_s1 + $0xd8] sm:$0xff] }
 0xbe8   :  { %v2517_v0 = vpack.c.bf16 %v2003_v62, %v2002_v60 }
 0xbe9   :  { %v2497_v39 = vpack.c.bf16 %v2590_v34, %v2589_v36  ;;  %v2006_v34 = vld [vmem:[%s3165_s1 + $0xf8] sm:$0xff] }
 0xbea   :  { %v1119_v61 = vpop.permute.xlu0 %1118  ;;  %v2598_v54 = vpop.permute.xlu1 %2597 }
 0xbeb   :  { %v1145_v3 = vsel %vm88_vm0, %v1141_v2, %v1119_v61  ;;  %v2600_v63 = vunpack.i.h.bf16 %v2598_v54  ;;  %v2599_v4 = vunpack.i.l.bf16 %v2598_v54  ;;  %v2513_v61 = vpack.c.bf16 %v2001_v45, %v2000_v41 }
 0xbed   :  { %2514 = vmatprep.subr.bf16.mxu0 %v2513_v61 }
 0xbee   :  { %v1131_v6 = vpop.permute.xlu0 %1130 }
 0xbef   :  { %v1149_v8 = vsel %vm259_vm2, %v1145_v3, %v1131_v6 }
 0xbf0   :  { %v1153_v10 = vmul.f32 %v1149_v8, %v2787_v29 }
 0xbf2   :  { %v1109_v14 = vpop.permute.xlu0 %1108  ;;  %v2473_v15 = vpack.c.bf16 %v1153_v10, %v1152_v9 }
 0xbf3   :  { %v1142_v21 = vsel %vm250_vm1, %v1086_v56, %v1109_v14 }
 0xbf4   :  { %2474 = vmatprep.subr.bf16.mxu1 %v2473_v15 }
 0xbf5   :  { %2476 = vmatpush3.bf16.msra.mxu1 %v2473_v15 }
 0xbf6   :  { %v1121_v16 = vpop.permute.xlu0 %1120 }
 0xbf7   :  { %v1146_v22 = vsel %vm88_vm0, %v1142_v21, %v1121_v16 }
 0xbf8   :  { %v1150_v28 = vsel %vm259_vm2, %v1146_v22, %v1133_v19 }
 0xbf9   :  { %v1154_v40 = vmul.f32 %v1150_v28, %v2799_v46  ;;  %v1159_v46 = vmul.f32 %v2995_v12, %v2841_v30  ;;  %v2505_v30 = vpack.c.bf16 %v2600_v63, %v2599_v4 }
 0xbfa   :  { %v1111_v17 = vpop.permute.xlu0 %1110 }
 0xbfb   :  { %v1143_v31 = vsel %vm250_vm1, %v1087_v35, %v1111_v17  ;;  %v2033_v17 = vld [vmem:[%s3165_s1 + $0x14a] ss:$0 sm:$0xff] }
 0xbfe   :  { %v1123_v24 = vpop.permute.xlu0 %1122 }
 0xbff   :  { %v1147_v27 = vsel %vm88_vm0, %v1143_v31, %v1123_v24 }
 0xc02   :  { %v1135_v29 = vpop.permute.xlu0 %1134 }
 0xc03   :  { %v1151_v33 = vsel %vm259_vm2, %v1147_v27, %v1135_v29 }
 0xc04   :  { %v1155_v42 = vmul.f32 %v1151_v33, %v2796_v44  ;;  %v1158_v44 = vmul.f32 %v2997_v11, %v2845_v32  ;;  %v2603_v11 = vpop.permute.xlu1 %2602 }
 0xc05   :  { %v2604_v58 = vunpack.i.l.bf16 %v2603_v11 }
 0xc06   :  { %v2477_v43 = vpack.c.bf16 %v1155_v42, %v1154_v40  ;;  %v2591_v50 = vpack.i.bf16 %v1159_v46, %v1158_v44  ;;  %v2007_v40 = vld [vmem:[%s3165_s1 + $0x100] sm:$0xff]  ;;  %v2012_v44 = vld [vmem:[%s3165_s1 + $0x128] sm:$0xff]  ;;  %v2013_v46 = vld [vmem:[%s3165_s1 + $0x130] sm:$0xff] }
 0xc07   :  { %v2525_v42 = vpack.c.bf16 %v2007_v40, %v2006_v34 }
 0xc08   :  { %2478 = vmatprep.subr.bf16.mxu1 %v2477_v43 }
 0xc09   :  { %2480 = vmatpush3.bf16.msra.mxu1 %v2477_v43  ;;  %v2008_v43 = vld [vmem:[%s3165_s1 + $0x108] sm:$0xff] }
 0xc0a   :  { %2498 = vmatprep.subr.bf16.mxu1 %v2497_v39 }
 0xc0c   :  { %2286 = vmatmul.mubr.msk.f32.vlgmr.msra.gmra.mrb[8].mxu1 %vm88_vm0, %v2995_v12  ;;  %v2605_v12 = vunpack.i.h.bf16 %v2603_v11 }
 0xc0d   :  { %2500 = vmatpush3.bf16.msra.mxu1 %v2497_v39  ;;  %v2009_v39 = vld [vmem:[%s3165_s1 + $0x110] sm:$0xff] }
 0xc0e   :  { %v2509_v35 = vpack.c.bf16 %v2605_v12, %v2604_v58  ;;  %v2036_v58 = vld [vmem:[%s3165_s1 + $0x14b] ss:$0 sm:$0xff] }
 0xcdf   :  { %v2287_v47 = vpop.f32.mrb[8].mxu1 }
 0xce0   :  { %v1234_v48 = vpop.f32.mrb[9].mxu1  ;;  %v1246_v5 = vsel %vm387_vm3, %v2287_v47, -inf }
 0xce1   :  { %v1243_v7 = vsel %vm387_vm3, %v1234_v48, -inf }
 0xce2   :  { %1244 = vmax.xlane.f32.xlu0 %v1243_v7  ;;  %v2011_v7 = vld [vmem:[%s3165_s1 + $0x120] sm:$0xff] }
 0xce6   :  { %1247 = vmax.xlane.f32.xlu0 %v1246_v5 }
 0xcfc   :  { %2592 = vrot.lane.b32.xlu0 %v2591_v50, %s2693_s15  ;;  %v2537_v50 = vpack.c.bf16 %v2013_v46, %v2012_v44 }
 0xd6f   :  { %v1245_v51 = vpop.xlane.xlu0 %1244 }
 0xd70   :  { %v1249_v52 = vsub.f32 %v1234_v48, %v1245_v51  ;;  %v2529_v48 = vpack.c.bf16 %v2009_v39, %v2008_v43 }
 0xd72   :  { %v1251_v53 = vmul.f32 1.442695, %v1249_v52 }
 0xd73   :  { %v1248_v59 = vpop.xlane.xlu0 %1247 }
 0xd74   :  { %2622 = vpow2.f32 %v1251_v53  ;;  %v1250_v55 = vsub.f32 %v2287_v47, %v1248_v59  ;;  %v2010_v47 = vld [vmem:[%s3165_s1 + $0x118] sm:$0xff] }
 0xd75   :  { %v2533_v5 = vpack.c.bf16 %v2011_v7, %v2010_v47 }
 0xd76   :  { %v1253_v56 = vmul.f32 1.442695, %v1250_v55 }
 0xd77   :  { %v2593_v57 = vpop.permute.xlu0 %2592 }
 0xd78   :  { %2624 = vpow2.f32 %v1253_v56  ;;  %v2595_v25 = vunpack.i.h.bf16 %v2593_v57  ;;  %v2594_v32 = vunpack.i.l.bf16 %v2593_v57 }
 0xd7a   :  { %v2501_v23 = vpack.c.bf16 %v2595_v25, %v2594_v32 }
 0xd7c   :  { %2502 = vmatprep.subr.bf16.mxu1 %v2501_v23 }
 0xd7d   :  { %2504 = vmatpush3.bf16.msra.mxu1 %v2501_v23 }
 0xd7e   :  { %v2623_v13 = vpop.eup %2622  ;;  %2506 = vmatprep.subr.bf16.mxu1 %v2505_v30 }
 0xd7f   :  { %2304 = vmatprep.mubr.msk.f32.mxu0 %vm387_vm3, %v2623_v13 }
 0xd81   :  { %2508 = vmatpush3.bf16.msra.mxu1 %v2505_v30 }
 0xd82   :  { %v2625_v37 = vpop.eup %2624  ;;  %2510 = vmatprep.subr.bf16.mxu1 %v2509_v35 }
 0xd83   :  { %2305 = vmatmul.mubr.msk.f32.vlgmr.msra.gmra.mrb[8].mxu0 %vm387_vm3, %v2625_v37 }
 0xd84   :  { %2516 = vmatpush3.bf16.msra.mxu0 %v2513_v61 }
 0xd85   :  { %2512 = vmatpush3.bf16.msra.mxu1 %v2509_v35  ;;  %2518 = vmatprep.subr.bf16.mxu0 %v2517_v0  ;;  %v2037_v35 = vld [vmem:[%s3165_s1 + $0x14c] ss:$0 sm:$0xff] }
 0xd88   :  { %2520 = vmatpush3.bf16.msra.mxu0 %v2517_v0 }
 0xd89   :  { %2530 = vmatprep.subr.bf16.mxu0 %v2529_v48 }
 0xe56   :  { %v2306_v1 = vpop.f32.mrb[8].mxu0 }
 0xe57   :  { %2626 = vrcp.f32 %v2306_v1  ;;  %v1327_v2 = vpop.f32.mrb[9].mxu0  ;;  %v2014_v1 = vld [vmem:[%s3165_s1 + $0x138] sm:$0xff] }
 0xe58   :  { %2628 = vrcp.f32 %v1327_v2  ;;  %v2015_v2 = vld [vmem:[%s3165_s1 + $0x140] sm:$0xff] }
 0xe61   :  { %v2627_v3 = vpop.eup %2626 }
 0xe62   :  { %v2629_v6 = vpop.eup %2628  ;;  %v1339_v8 = vmul.f32 %v2627_v3, %v2625_v37  ;;  %v2541_v3 = vpack.c.bf16 %v2015_v2, %v2014_v1 }
 0xe63   :  { %v1338_v9 = vmul.f32 %v2629_v6, %v2623_v13  ;;  %v2038_v6 = vld [vmem:[%s3165_s1 + $0x149] ss:$0 sm:$0xff] }
 0xe64   :  { %v1341_v14 = vmul.f32 %v1339_v8, %v2885_v20 }
 0xe65   :  { %v1340_v10 = vmul.f32 %v1338_v9, %v2883_v18 }
 0xe67   :  { %2323 = vmatprep.mubr.msk.f32.mxu1 %vm387_vm3, %v1340_v10 }
 0xe68   :  { %2324 = vmatmul.mubr.msk.f32.vlgmr.msra.gmra.mrb[10].mxu1 %vm387_vm3, %v1341_v14 }
 0xf3b   :  { %v2325_v15 = vpop.f32.mrb[10].mxu1 }
 0xf3c   :  { %v1446_v16 = vpop.f32.mrb[11].mxu1 }
 0xf3d   :  { %2334 = vmatprep.mubr.msk.f32.mxu0 %vm88_vm0, %v1446_v16 }
 0xf3e   :  { %2335 = vmatmul.mubr.msk.f32.vlgmr.msra.gmra.mrb[10].mxu0 %vm88_vm0, %v2325_v15 }
 0xf3f   :  { %2532 = vmatpush3.bf16.msra.mxu0 %v2529_v48 }
 0xf40   :  { %2534 = vmatprep.subr.bf16.mxu0 %v2533_v5 }
 0xf43   :  { %2536 = vmatpush3.bf16.msra.mxu0 %v2533_v5 }
 0xf44   :  { %2538 = vmatprep.subr.bf16.mxu0 %v2537_v50 }
 0xf47   :  { %2540 = vmatpush3.bf16.msra.mxu0 %v2537_v50 }
 0xf48   :  { %2542 = vmatprep.subr.bf16.mxu0 %v2541_v3 }
 0xf4b   :  { %2544 = vmatpush3.bf16.msra.mxu0 %v2541_v3 }
0x1011   :  { %v2336_v19 = vpop.f32.mrb[10].mxu0 }
0x1012   :  { %v1537_v21 = vadd.f32 %v2336_v19, %v2033_v17  ;;  %v1531_v22 = vpop.f32.mrb[11].mxu0 }
0x1013   :  { %v1532_v18 = vadd.f32 %v2033_v17, %v1531_v22  ;;  %v2041_v17 = vld [vmem:[%s3165_s1 + $0x14d] ss:$0 sm:$0xff] }
0x1014   :  { %v1541_v20 = vadd.f32 %v1537_v21, %v2986_v49  ;;  %v2004_v49 = vld [vmem:[%s3165_s1 + $0xe8] sm:$0xff] }
0x1015   :  { %v1540_v24 = vadd.f32 %v1532_v18, %v2984_v38  ;;  %v2005_v38 = vld [vmem:[%s3165_s1 + $0xf0] sm:$0xff] }
0x1016   :  { %v1545_v26 = vsel %vm88_vm0, %v1541_v20, 0.0  ;;  %v1551_v29 = vmul.f32 %v1541_v20, %v1541_v20  ;;  %v2521_v36 = vpack.c.bf16 %v2005_v38, %v2004_v49  ;;  %v2694_v49 = vmov 0.0|0.0  }
0x1017   :  { %1546 = vadd.xlane.f32.xlu0 %v1545_v26  ;;  %v1542_v28 = vsel %vm88_vm0, %v1540_v24, 0.0  ;;  %v1550_v31 = vmul.f32 %v1540_v24, %v1540_v24  ;;  %v2696_v38 = vmov 0.0  }
0x1018   :  { %1543 = vadd.xlane.f32.xlu1 %v1542_v28  ;;  %v1555_v33 = vsel %vm88_vm0, %v1551_v29, 0.0  ;;  %2522 = vmatprep.subr.bf16.mxu1 %v2521_v36 }
0x1019   :  { %v1552_v27 = vsel %vm88_vm0, %v1550_v31, 0.0  ;;  %2524 = vmatpush3.bf16.msra.mxu1 %v2521_v36 }
0x101a   :  { %2526 = vmatprep.subr.bf16.mxu1 %v2525_v42 }
0x101c   :  { %1553 = vadd.xlane.f32.xlu1 %v1552_v27 }
0x101d   :  { %2528 = vmatpush3.bf16.msra.mxu1 %v2525_v42 }
0x101e   :  { %2545 = vmatprep.subr.bf16.mxu1 %v2694_v49 }
0x1020   :  { %1556 = vadd.xlane.f32.xlu1 %v1555_v33 }
0x10a4   :  { %v1547_v53 = vpop.xlane.xlu0 %1546 }
0x10a5   :  { %v1544_v51 = vpop.xlane.xlu1 %1543  ;;  %v1549_v59 = vmul.f32 0.03125, %v1547_v53 }
0x10a6   :  { %v1548_v52 = vmul.f32 0.03125, %v1544_v51 }
0x10a7   :  { %v1563_v4 = vmul.f32 %v1549_v59, %v1549_v59  ;;  %v1561_v37 = vsub.f32 %v1541_v20, %v1549_v59  ;;  %v2044_v59 = vld [vmem:[%s3165_s1 + $0x14e] ss:$0 sm:$0xff] }
0x10a8   :  { %v1562_v55 = vmul.f32 %v1548_v52, %v1548_v52  ;;  %v1560_v30 = vsub.f32 %v1540_v24, %v1548_v52 }
0x10a9   :  { %v1554_v54 = vpop.xlane.xlu1 %1553 }
0x10aa   :  { %v1558_v56 = vmul.f32 0.03125, %v1554_v54 }
0x10ac   :  { %v1564_v63 = vsub.f32 %v1558_v56, %v1562_v55 }
0x10ad   :  { %v1557_v57 = vpop.xlane.xlu1 %1556 }
0x10ae   :  { %v1566_v25 = vadd.f32 1e-05, %v1564_v63  ;;  %v1559_v32 = vmul.f32 0.03125, %v1557_v57  ;;  %v2045_v63 = vld [vmem:[%s3165_s1 + $0x14f] ss:$0 sm:$0xff]  ;;  %s2697_s1 = smov [#allocation5]  }
0x10af   :  { %s1965_s8 = sshll.u32 %s2697_s1, 4  ;;  %s1966_s8 = int_to_ptr.vmem [resolvable:$true] %s1965_s8 }
0x10b0   :  { %2630 = vrsqrt.f32 %v1566_v25  ;;  %v1565_v11 = vsub.f32 %v1559_v32, %v1563_v4  ;;  %s2660_s9 = scalar_lea.vmem %s1966_s8, 32  ;;  %p2665_p9 = scmp.lt.s32.totalorder %s1966_s8, %s1966_s8 }
0x10b1   :  { %p2661_p8 = scmp.ne.s32.totalorder %s1966_s8, %s2660_s9  ;;  %p2666_p10 = scmp.lt.s32.totalorder %s2660_s9, %s2660_s9 }
0x10b2   :  { %v1567_v23 = vadd.f32 1e-05, %v1565_v11 }
0x10b3   :  { %p2667_p11 = por %p2666_p10, %p2665_p9 }
0x10b4   :  { %2632 = vrsqrt.f32 %v1567_v23  ;;  %v1802_v23 = vld [vmem:[#allocation2 + $0x108] sm:$0xff] }
0x10b5   :  { %p2668_p12 = pnand %p2667_p11, %p2661_p8 }
0x10ba   :  { %v2631_v12 = vpop.eup %2630 }
0x10bb   :  { %v1570_v13 = vmul.f32 %v2631_v12, %v1560_v30  ;;  %v1803_v30 = vld [vmem:[#allocation2 + $0x110] sm:$0xff] }
0x10bd   :  { %v1576_v41 = vmul.f32 %v2036_v58, %v1570_v13  ;;  %v2549_v13 = vpack.c.bf16 %v1803_v30, %v1802_v23 }
0x10be   :  { %v2633_v45 = vpop.eup %2632 }
0x10bf   :  { %v1571_v60 = vmul.f32 %v2633_v45, %v1561_v37  ;;  %v1582_v61 = vadd.f32 %v2037_v35, %v1576_v41  ;;  %v1805_v37 = vld [vmem:[#allocation2 + $0x120] sm:$0xff] }
0x10c1   :  { %v1577_v62 = vmul.f32 %v2036_v58, %v1571_v60  ;;  %2345 = vmatprep.mubr.msk.f32.mxu1 %vm88_vm0, %v1582_v61  ;;  %v1801_v58 = vld [vmem:[#allocation2 + $0x100] sm:$0x3] }
0x10c3   :  { %v1583_v0 = vadd.f32 %v2037_v35, %v1577_v62  ;;  %v1804_v35 = vld [vmem:[#allocation2 + $0x118] sm:$0xff] }
0x10c4   :  { %v2552_v41 = vpack.c.bf16 %v1805_v37, %v1804_v35 }
0x10c5   :  { %2346 = vmatmul.mubr.msk.f32.vlgmr.msra.gmra.mrb[12].mxu1 %vm88_vm0, %v1583_v0 }
0x10c6   :  { %2371 = vmatprep.mubr.msk.f32.mxu1 %vm2695_vm4, %v2696_v38 }
0x1198   :  { %v2347_v8 = vpop.f32.mrb[12].mxu1 }
0x1199   :  { %v1666_v9 = vadd.f32 %v2347_v8, %v2038_v6  ;;  %v1660_v10 = vpop.f32.mrb[13].mxu1 }
0x119a   :  { %v1661_v14 = vadd.f32 %v2038_v6, %v1660_v10 }
0x119b   :  { %v1670_v16 = vmax.f32 %v1666_v9, 0.0 }
0x119c   :  { %v1669_v15 = vmax.f32 %v1661_v14, 0.0 }
0x119e   :  { %2364 = vmatprep.mubr.msk.f32.mxu0 %vm387_vm3, %v1669_v15 }
0x119f   :  { %2365 = vmatmul.mubr.msk.f32.vlgmr.msra.gmra.mrb[12].mxu0 %vm387_vm3, %v1670_v16 }
0x1272   :  { %v2366_v19 = vpop.f32.mrb[12].mxu0 }
0x1273   :  { %v1753_v21 = vadd.f32 %v2366_v19, %v2041_v17  ;;  %v1747_v22 = vpop.f32.mrb[13].mxu0 }
0x1274   :  { %v1748_v18 = vadd.f32 %v2041_v17, %v1747_v22 }
0x1275   :  { %v1757_v20 = vadd.f32 %v1753_v21, %v1583_v0 }
0x1276   :  { %v1756_v24 = vadd.f32 %v1748_v18, %v1582_v61  ;;  %v2047_v61 = vld [vmem:[#allocation2 + $0x128] ss:$0 sm:$0xff] }
0x1277   :  { %v1761_v26 = vsel %vm88_vm0, %v1757_v20, 0.0  ;;  %v1767_v28 = vmul.f32 %v1757_v20, %v1757_v20 }
0x1278   :  { %1762 = vadd.xlane.f32.xlu1 %v1761_v26  ;;  %v1758_v31 = vsel %vm88_vm0, %v1756_v24, 0.0  ;;  %v1766_v27 = vmul.f32 %v1756_v24, %v1756_v24 }
0x1279   :  { %1759 = vadd.xlane.f32.xlu0 %v1758_v31  ;;  %v1771_v29 = vsel %vm88_vm0, %v1767_v28, 0.0 }
0x127a   :  { %v1768_v33 = vsel %vm88_vm0, %v1766_v27, 0.0 }
0x127c   :  { %1772 = vadd.xlane.f32.xlu1 %v1771_v29 }
0x127d   :  { %1769 = vadd.xlane.f32.xlu0 %v1768_v33 }
0x1305   :  { %v1763_v34 = vpop.xlane.xlu1 %1762 }
0x1306   :  { %v1765_v36 = vmul.f32 0.03125, %v1763_v34  ;;  %v1760_v40 = vpop.xlane.xlu0 %1759 }
0x1307   :  { %v1764_v42 = vmul.f32 0.03125, %v1760_v40 }
0x1308   :  { %v1779_v39 = vmul.f32 %v1765_v36, %v1765_v36  ;;  %v1777_v52 = vsub.f32 %v1757_v20, %v1765_v36 }
0x1309   :  { %v1773_v43 = vpop.xlane.xlu1 %1772  ;;  %v1778_v7 = vmul.f32 %v1764_v42, %v1764_v42  ;;  %v1776_v54 = vsub.f32 %v1756_v24, %v1764_v42 }
0x130a   :  { %v1775_v47 = vmul.f32 0.03125, %v1773_v43  ;;  %v1770_v48 = vpop.xlane.xlu0 %1769 }
0x130b   :  { %v1774_v5 = vmul.f32 0.03125, %v1770_v48 }
0x130c   :  { %v1781_v44 = vsub.f32 %v1775_v47, %v1779_v39 }
0x130d   :  { %v1780_v46 = vsub.f32 %v1774_v5, %v1778_v7 }
0x130e   :  { %v1783_v50 = vadd.f32 1e-05, %v1781_v44 }
0x130f   :  { %v1782_v51 = vadd.f32 1e-05, %v1780_v46 }
0x1310   :  { %2634 = vrsqrt.f32 %v1783_v50 }
0x1311   :  { %2636 = vrsqrt.f32 %v1782_v51 }
0x131a   :  { %v2635_v53 = vpop.eup %2634 }
0x131b   :  { %v2637_v55 = vpop.eup %2636  ;;  %v1787_v56 = vmul.f32 %v2635_v53, %v1777_v52 }
0x131c   :  { %v1786_v57 = vmul.f32 %v2637_v55, %v1776_v54 }
0x131d   :  { %v1793_v4 = vmul.f32 %v2044_v59, %v1787_v56 }
0x131e   :  { %v1792_v25 = vmul.f32 %v2044_v59, %v1786_v57 }
0x131f   :  { %v1799_v32 = vadd.f32 %v2045_v63, %v1793_v4 }
0x1320   :  { %v1798_v11 = vadd.f32 %v2045_v63, %v1792_v25 }
0x1322   :  { %v2546_v12 = vpack.c.bf16 %v1799_v32, %v1798_v11 }
0x1324   :  { %2547 = vmatpush3.bf16.msra.mxu1 %v2546_v12 }
0x1325   :  { %2548 = vmatprep.subr.bf16.mxu1 %v2694_v49 }
0x1327   :  { %2372 = vmatmul.mubr.msk.f32.vlgmr.msra.gmra.mrb[14].mxu1 %vm250_vm1, %v1801_v58 }
0x1328   :  { %2550 = vmatpush3.bf16.msra.mxu1 %v2549_v13  ;;  %2382 = vmatprep.mubr.msk.f32.mxu1 %vm2695_vm4, %v2696_v38 }
0x1329   :  { %2551 = vmatprep.subr.bf16.mxu1 %v2694_v49 }
0x132c   :  { %2553 = vmatpush3.bf16.msra.mxu1 %v2552_v41 }
0x13fa   :  { %v1876_v45 = vpop.f32.mrb[14].mxu1 }
0x13fb   :  { %v2373_v60 = vpop.f32.mrb[15].mxu1  ;;  %2383 = vmatmul.mubr.msk.f32.vlgmr.msra.gmra.mrb[16].mxu1 %vm88_vm0, %v1876_v45 }
0x14ce   :  { %v1953_v62 = vpop.f32.mrb[16].mxu1 }
0x14cf   :  { %v1954_v0 = vadd.f32 %v2047_v61, %v1953_v62  ;;  %v2384_v1 = vpop.f32.mrb[17].mxu1 }
0x14d1   :  { %1958 = vst.msk [vmem:[#allocation5] sm:$0x3] %vm1957_vm5, %v1954_v0 }
0x14d2   :  { %2671 = shalt.err (!%p2668_p12)
}
0x14d3   :  { %s2672_s16 = scalar_lea.hbm %s3167_s3, 32 }
0x14d4   :  { %p2673_p13 = scmp.ne.s32.totalorder %s3167_s3, %s2672_s16  ;;  %p2676_p0 = scmp.lt.u32.totalorder %s2672_s16, %s3167_s3 }
0x14d6   :  { %p2678_p1 = pnand %p2676_p0, %p2673_p13 }
0x14d8   :  { %2681 = shalt.err (!%p2678_p1)
}
0x14d9   :  { %1968 = dma.vmem_to_hbm [thread:$0]  %s1966_s8, 32, %s3167_s3, [#allocation4]  }
0x14da   :  { %2684 = dma.done.wait [#allocation4], 32  }
0x14db   :  { %2685 = vsyncadd [#allocation4], 4294967264 }
0x14dc   :  { %1972 = vsyncpa [#allocation3], 1 }
0x14dd   :  { %1973 = vsyncpa [#allocation4], 1 }

</bundles_post_ra>
